<compile_context>
chip_gen: v7x
topology: tpu7x:2x2x1
jax: 0.10.0
libtpu: 0.0.40
codegen_flags: <defaults>
</compile_context>

<pallas_src>
import jax
import jax.numpy as jnp
from jax.experimental import pallas as pl
from jax.experimental.pallas import tpu as pltpu


def mlp_kernel(x_ref, w1_ref, b1_ref, w2_ref, b2_ref, o_ref):
    # x_ref:  [bb, C, HW]  native layout (HW on the 128-lane axis)
    # w1_ref: [C, C]       pre-transposed [in, out], pre-scaled by 1/(H*W), f32
    # b1_ref: [1, C]       f32
    # w2_ref: [C, NCp]     pre-transposed [in, out], columns padded to >=128, f32
    # b2_ref: [1, NCp]     f32
    # o_ref:  [bb, NCp]    f32
    #
    # Global average pool = reduce over the lane (HW) axis, f32 accumulation.
    # The 1/HW scale is folded into w1, so a plain sum suffices.
    pooled = jnp.sum(x_ref[...], axis=-1, dtype=jnp.float32)            # [bb, C]
    h = jnp.dot(pooled, w1_ref[...],
                preferred_element_type=jnp.float32) + b1_ref[...]       # [bb, C]
    y = jnp.dot(h, w2_ref[...],
                preferred_element_type=jnp.float32) + b2_ref[...]       # [bb, NCp]
    o_ref[...] = y.astype(o_ref.dtype)


def prepare_params(w1, b1, w2, b2, hw):
    """One-time weight prep (call ONCE, not per forward):
       - transpose to [in, out] for lane-dense MXU matmuls,
       - fold the 1/(H*W) global-average-pool scale into w1,
       - pad the class dim up to a multiple of 128 lanes (unmasked stores),
       - biases reshaped to [1, out]; everything kept f32 (weights are tiny,
         x dominates HBM bytes)."""
    inv_hw = 1.0 / float(hw)
    num_class, in_c = w2.shape
    ncp = ((num_class + 127) // 128) * 128
    w1_t = (jnp.transpose(w1).astype(jnp.float32) * inv_hw)                  # [C, C]
    w2_t = jnp.zeros((in_c, ncp), jnp.float32).at[:, :num_class].set(
        jnp.transpose(w2).astype(jnp.float32))                               # [C, NCp]
    b1_r = b1.reshape(1, -1).astype(jnp.float32)                             # [1, C]
    b2_r = jnp.zeros((1, ncp), jnp.float32).at[:, :num_class].set(
        b2.astype(jnp.float32))                                              # [1, NCp]
    return w1_t, b1_r, w2_t, b2_r, num_class


_X_PIPELINE_BUDGET = 24 * 1024 * 1024    # x double-buffer budget (v7x-safe)
_GRIDLESS_MAX_X_BYTES = 2 * 1024 * 1024  # below this, grid/pipeline overhead > benefit


def _pick_batch_block(B, HW, C, itemsize, requested):
    per_sample = HW * C * itemsize
    # Cap so 2 * bb * per_sample (x double-buffer) stays within the budget.
    cap = max(8, (_X_PIPELINE_BUDGET // (2 * per_sample)) // 8 * 8)
    bb = min(int(requested), cap)
    # Prefer >= 2 grid steps so v7x's two TensorCores can split the batch axis.
    half = (((B + 1) // 2) + 7) // 8 * 8
    bb = min(bb, max(8, half))
    return max(8, (bb // 8) * 8)


def mlp_forward(x_nchw, params, *, batch_block=256):
    """x_nchw: [B, C, H, W] (module layout). params from prepare_params."""
    w1_t, b1_r, w2_t, b2_r, num_class = params
    B, C, H, W = x_nchw.shape
    HW = H * W
    NCp = w2_t.shape[1]

    # Native layout: reshape only (no data movement) -- the pool happens in-kernel.
    x_r = x_nchw.reshape(B, C, HW)
    itemsize = jnp.dtype(x_r.dtype).itemsize

    cost = pl.CostEstimate(
        flops=B * HW * C + 2 * B * C * C + 2 * B * C * NCp,
        transcendentals=0,
        bytes_accessed=B * HW * C * itemsize
                       + (C * C + C * NCp + C + NCp) * 4
                       + B * NCp * 4,
    )

    x_bytes = B * HW * C * itemsize
    if x_bytes <= _GRIDLESS_MAX_X_BYTES and B <= batch_block:
        # Small problem: one grid-less invocation, everything resident in VMEM.
        vmem = pl.BlockSpec(memory_space=pltpu.MemorySpace.VMEM)
        out = pl.pallas_call(
            mlp_kernel,
            out_shape=jax.ShapeDtypeStruct((B, NCp), jnp.float32),
            in_specs=[vmem] * 5,
            out_specs=vmem,
            cost_estimate=cost,
        )(x_r, w1_t, b1_r, w2_t, b2_r)
        return out[:, :num_class]

    # Batch-tiled path: 1-D "parallel" grid over the batch axis (megacore on v7x).
    bb = _pick_batch_block(B, HW, C, itemsize, batch_block)
    n_steps = -(-B // bb)
    Bp = n_steps * bb
    if Bp != B:
        # TODO(synk): this pad copies x once; a ragged last block would avoid it.
        x_r = jnp.pad(x_r, ((0, Bp - B), (0, 0), (0, 0)))

    grid_spec = pltpu.PrefetchScalarGridSpec(
        num_scalar_prefetch=0,
        grid=(n_steps,),
        in_specs=[
            pl.BlockSpec((bb, C, HW), lambda i: (i, 0, 0)),   # x: pipelined per step
            pl.BlockSpec((C, C), lambda i: (0, 0)),           # weights/biases: constant
            pl.BlockSpec((1, C), lambda i: (0, 0)),           #  index_maps, fetched once
            pl.BlockSpec((C, NCp), lambda i: (0, 0)),
            pl.BlockSpec((1, NCp), lambda i: (0, 0)),
        ],
        out_specs=pl.BlockSpec((bb, NCp), lambda i: (i, 0)),
    )
    out = pl.pallas_call(
        mlp_kernel,
        out_shape=jax.ShapeDtypeStruct((Bp, NCp), jnp.float32),
        grid_spec=grid_spec,
        compiler_params=pltpu.CompilerParams(
            dimension_semantics=("parallel",)),
        cost_estimate=cost,
    )(x_r, w1_t, b1_r, w2_t, b2_r)
    return out[:B, :num_class]


def init_params(key, input_channels, num_class, pooling_size=1):
    """Deterministic PyTorch-style Linear init (uniform +/- 1/sqrt(fan_in))."""
    k1, k2, k3, k4 = jax.random.split(key, 4)
    in1 = input_channels * pooling_size ** 2
    bound1 = 1.0 / jnp.sqrt(in1)
    bound2 = 1.0 / jnp.sqrt(input_channels)
    w1 = jax.random.uniform(k1, (input_channels, in1), jnp.float32, -bound1, bound1)
    b1 = jax.random.uniform(k2, (input_channels,), jnp.float32, -bound1, bound1)
    w2 = jax.random.uniform(k3, (num_class, input_channels), jnp.float32, -bound2, bound2)
    b2 = jax.random.uniform(k4, (input_channels if False else num_class,), jnp.float32,
                            -bound2, bound2)
    return w1, b1, w2, b2


if __name__ == "__main__":
    # Module defaults: input_channels=256, num_class=128, pooling_size=1.
    C, NUM_CLASS = 256, 128
    H = W = 8
    HW = H * W

    key = jax.random.PRNGKey(0)
    kx1, kx2, kp, kp2 = jax.random.split(key, 4)
    w1, b1, w2, b2 = init_params(kp, C, NUM_CLASS, pooling_size=1)
    params = prepare_params(w1, b1, w2, b2, hw=HW)

    def torch_ref(xin, wa, ba, wb, bbias):
        gap = jnp.mean(xin.reshape(xin.shape[0], C, HW), axis=-1)
        return (gap @ wa.T + ba) @ wb.T + bbias

    # --- run 1: small f32 batch -> grid-less path ---
    B1 = 4
    x1 = jax.random.normal(kx1, (B1, C, H, W), jnp.float32)
    out1 = jax.block_until_ready(mlp_forward(x1, params))
    ref1 = torch_ref(x1, w1, b1, w2, b2)
    assert out1.shape == (B1, NUM_CLASS), out1.shape
    assert jnp.allclose(out1, ref1, rtol=1e-3, atol=1e-3), \
        float(jnp.max(jnp.abs(out1 - ref1)))

    # --- run 2: bf16 x (producer-emitted), non-divisible batch -> tiled + pad path ---
    B2 = 20
    x2 = jax.random.normal(kx2, (B2, C, H, W), jnp.float32).astype(jnp.bfloat16)
    out2 = jax.block_until_ready(mlp_forward(x2, params, batch_block=8))
    ref2 = torch_ref(x2.astype(jnp.float32), w1, b1, w2, b2)
    assert out2.shape == (B2, NUM_CLASS), out2.shape
    assert jnp.allclose(out2, ref2, rtol=1e-2, atol=1e-2), \
        float(jnp.max(jnp.abs(out2 - ref2)))

    # --- run 3: num_class < 128 (lane-padded in prepare_params, sliced outside) ---
    NC3 = 10
    w1c, b1c, w2c, b2c = init_params(kp2, C, NC3, pooling_size=1)
    params3 = prepare_params(w1c, b1c, w2c, b2c, hw=HW)
    out3 = jax.block_until_ready(mlp_forward(x1, params3))
    ref3 = torch_ref(x1, w1c, b1c, w2c, b2c)
    assert out3.shape == (B1, NC3), out3.shape
    assert jnp.allclose(out3, ref3, rtol=1e-3, atol=1e-3), \
        float(jnp.max(jnp.abs(out3 - ref3)))

    print("KERNEL_OK")
</pallas_src>

<mosaic_0001>
module attributes {stable_mosaic.version = 11 : i64} {
  func.func @mlp_kernel(%arg0: memref<4x256x64xf32, #tpu.memory_space<vmem>>, %arg1: memref<256x256xf32, #tpu.memory_space<vmem>>, %arg2: memref<1x256xf32, #tpu.memory_space<vmem>>, %arg3: memref<256x128xf32, #tpu.memory_space<vmem>>, %arg4: memref<1x128xf32, #tpu.memory_space<vmem>>, %arg5: memref<4x128xf32, #tpu.memory_space<vmem>>) attributes {dimension_semantics = [], scalar_prefetch = 0 : i64, scratch_operands = 0 : i64, tpu.core_type = #tpu.core_type<tc>} {
    %c0 = arith.constant 0 : index
    %c0_0 = arith.constant 0 : index
    %c0_1 = arith.constant 0 : index
    %0 = vector.load %arg0[%c0, %c0_0, %c0_1] : memref<4x256x64xf32, #tpu.memory_space<vmem>>, vector<4x256x64xf32>
    %cst = arith.constant dense<0.000000e+00> : vector<4x256xf32>
    %1 = vector.multi_reduction <add>, %0, %cst [2] : vector<4x256x64xf32> to vector<4x256xf32>
    %c0_2 = arith.constant 0 : index
    %c0_3 = arith.constant 0 : index
    %2 = vector.load %arg1[%c0_2, %c0_3] : memref<256x256xf32, #tpu.memory_space<vmem>>, vector<256x256xf32>
    %cst_4 = arith.constant dense<0.000000e+00> : vector<4x256xf32>
    %3 = tpu.matmul %1, %2, %cst_4 {dimension_numbers = #tpu.dot_dimension_numbers<[1], [0], [0], [1], [0, 0, 1, 1], [], []>} : vector<4x256xf32>, vector<256x256xf32>, vector<4x256xf32> -> vector<4x256xf32>
    %c0_5 = arith.constant 0 : index
    %c0_6 = arith.constant 0 : index
    %4 = vector.load %arg2[%c0_5, %c0_6] : memref<1x256xf32, #tpu.memory_space<vmem>>, vector<1x256xf32>
    %5 = vector.broadcast %4 : vector<1x256xf32> to vector<4x256xf32>
    %6 = arith.addf %3, %5 : vector<4x256xf32>
    %c0_7 = arith.constant 0 : index
    %c0_8 = arith.constant 0 : index
    %7 = vector.load %arg3[%c0_7, %c0_8] : memref<256x128xf32, #tpu.memory_space<vmem>>, vector<256x128xf32>
    %cst_9 = arith.constant dense<0.000000e+00> : vector<4x128xf32>
    %8 = tpu.matmul %6, %7, %cst_9 {dimension_numbers = #tpu.dot_dimension_numbers<[1], [0], [0], [1], [0, 0, 1, 1], [], []>} : vector<4x256xf32>, vector<256x128xf32>, vector<4x128xf32> -> vector<4x128xf32>
    %c0_10 = arith.constant 0 : index
    %c0_11 = arith.constant 0 : index
    %9 = vector.load %arg4[%c0_10, %c0_11] : memref<1x128xf32, #tpu.memory_space<vmem>>, vector<1x128xf32>
    %10 = vector.broadcast %9 : vector<1x128xf32> to vector<4x128xf32>
    %11 = arith.addf %8, %10 : vector<4x128xf32>
    %c0_12 = arith.constant 0 : index
    %c0_13 = arith.constant 0 : index
    %12 = vector.load %arg5[%c0_12, %c0_13] : memref<4x128xf32, #tpu.memory_space<vmem>>, vector<4x128xf32>
    tpu.vector_store %arg5[%c0_12, %c0_13], %11 {strides = array<i32>} : memref<4x128xf32, #tpu.memory_space<vmem>>, vector<4x128xf32>,
    return
  }
}

</mosaic_0001>

<bundles_post_ra>
// kernel: tpu_custom_call.1
= control target key start
LH: loop header
LB: loop body
LE: loop exit
PB: predicated region body
PF: predicated region fallthrough
CT: control target
= control target key end

     0   :  { %vm149_vm0 = vcmask 523264   ;;  %s3086_s0 = inlined_call_operand.vmem [shape: f32[4,256,64], index: 0, kind: input, shape index: {}]   ;;  %s3087_s1 = inlined_call_operand.vmem [shape: f32[256,256], index: 1, kind: input, shape index: {}]   ;;  %s3088_s2 = inlined_call_operand.vmem [shape: f32[1,256], index: 2, kind: input, shape index: {}]   ;;  %s3089_s3 = inlined_call_operand.vmem [shape: f32[256,128], index: 3, kind: input, shape index: {}]   ;;  %s3090_s4 = inlined_call_operand.vmem [shape: f32[1,128], index: 4, kind: input, shape index: {}]   ;;  %s3091_s5 = inlined_call_operand.hbm [shape: f32[4,128], index: 5, kind: output, shape index: {}]  }
   0x1   :  { %v69_v0 = vld [vmem:[%s3086_s0 + $0x180] sm:$0xff]  ;;  %v70_v2 = vld [vmem:[%s3086_s0 + $0x188] sm:$0xff]  ;;  %v39_v13 = vld [vmem:[%s3086_s0 + $0x90] sm:$0xff] }
   0x2   :  { %v37_v1 = vld [vmem:[%s3086_s0 + $0x80] sm:$0xff]  ;;  %v294_v3 = vsel %vm149_vm0, %v69_v0, 0.0  ;;  %v38_v5 = vld [vmem:[%s3086_s0 + $0x88] sm:$0xff]  ;;  %v297_v6 = vsel %vm149_vm0, %v70_v2, 0.0  ;;  %v204_v15 = vsel %vm149_vm0, %v39_v13, 0.0  ;;  %v71_v16 = vld [vmem:[%s3086_s0 + $0x190] sm:$0xff] }
   0x3   :  { %v198_v4 = vsel %vm149_vm0, %v37_v1, 0.0  ;;  %295 = vadd.xlane.f32.xlu1 %v294_v3  ;;  %v201_v7 = vsel %vm149_vm0, %v38_v5, 0.0  ;;  %v22_v8 = vld [vmem:[%s3086_s0 + $0x8] sm:$0xff]  ;;  %v21_v9 = vld [vmem:[%s3086_s0] sm:$0xff]  ;;  %v300_v18 = vsel %vm149_vm0, %v71_v16, 0.0  ;;  %v40_v24 = vld [vmem:[%s3086_s0 + $0x98] sm:$0xff] }
   0x4   :  { %199 = vadd.xlane.f32.xlu0 %v198_v4  ;;  %v153_v10 = vsel %vm149_vm0, %v22_v8, 0.0  ;;  %v150_v11 = vsel %vm149_vm0, %v21_v9, 0.0  ;;  %v53_v12 = vld [vmem:[%s3086_s0 + $0x100] sm:$0xff]  ;;  %v54_v17 = vld [vmem:[%s3086_s0 + $0x108] sm:$0xff]  ;;  %v23_v25 = vld [vmem:[%s3086_s0 + $0x10] sm:$0xff]  ;;  %v207_v26 = vsel %vm149_vm0, %v40_v24, 0.0 }
   0x5   :  { %v246_v14 = vsel %vm149_vm0, %v53_v12, 0.0  ;;  %v249_v19 = vsel %vm149_vm0, %v54_v17, 0.0  ;;  %v102_v20 = vld [vmem:[%s3086_s0 + $0x288] sm:$0xff]  ;;  %v101_v21 = vld [vmem:[%s3086_s0 + $0x280] sm:$0xff]  ;;  %v156_v27 = vsel %vm149_vm0, %v23_v25, 0.0  ;;  %v72_v28 = vld [vmem:[%s3086_s0 + $0x198] sm:$0xff] }
   0x6   :  { %v393_v22 = vsel %vm149_vm0, %v102_v20, 0.0  ;;  %v390_v23 = vsel %vm149_vm0, %v101_v21, 0.0  ;;  %v55_v29 = vld [vmem:[%s3086_s0 + $0x110] sm:$0xff] }
   0x7   :  { %298 = vadd.xlane.f32.xlu1 %v297_v6 }
   0x8   :  { %202 = vadd.xlane.f32.xlu0 %v201_v7 }
   0xb   :  { %154 = vadd.xlane.f32.xlu1 %v153_v10 }
   0xc   :  { %151 = vadd.xlane.f32.xlu0 %v150_v11 }
   0xf   :  { %247 = vadd.xlane.f32.xlu1 %v246_v14 }
  0x10   :  { %205 = vadd.xlane.f32.xlu0 %v204_v15 }
  0x13   :  { %301 = vadd.xlane.f32.xlu1 %v300_v18 }
  0x14   :  { %250 = vadd.xlane.f32.xlu0 %v249_v19 }
  0x17   :  { %394 = vadd.xlane.f32.xlu1 %v393_v22 }
  0x18   :  { %391 = vadd.xlane.f32.xlu0 %v390_v23 }
  0x1b   :  { %208 = vadd.xlane.f32.xlu1 %v207_v26 }
  0x1c   :  { %157 = vadd.xlane.f32.xlu0 %v156_v27 }
  0x1d   :  { %10 = vsyncpa [#allocation3], 0  ;;  %v303_v30 = vsel %vm149_vm0, %v72_v28, 0.0  ;;  %v252_v31 = vsel %vm149_vm0, %v55_v29, 0.0  ;;  %v86_v32 = vld [vmem:[%s3086_s0 + $0x208] sm:$0xff]  ;;  %v85_v33 = vld [vmem:[%s3086_s0 + $0x200] sm:$0xff] }
  0x1e   :  { %v345_v34 = vsel %vm149_vm0, %v86_v32, 0.0  ;;  %v342_v35 = vsel %vm149_vm0, %v85_v33, 0.0  ;;  %v133_v36 = vld [vmem:[%s3086_s0 + $0x380] sm:$0xff]  ;;  %v103_v37 = vld [vmem:[%s3086_s0 + $0x290] sm:$0xff]  ;;  %v24_v40 = vld [vmem:[%s3086_s0 + $0x18] sm:$0xff]  ;;  %vm749_vm1 = vcmask 130112  }
  0x1f   :  { %304 = vadd.xlane.f32.xlu1 %v303_v30  ;;  %v486_v38 = vsel %vm149_vm0, %v133_v36, 0.0  ;;  %v396_v39 = vsel %vm149_vm0, %v103_v37, 0.0  ;;  %v134_v41 = vld [vmem:[%s3086_s0 + $0x388] sm:$0xff]  ;;  %v159_v42 = vsel %vm149_vm0, %v24_v40, 0.0  ;;  %v56_v44 = vld [vmem:[%s3086_s0 + $0x118] sm:$0xff]  ;;  %v41_v45 = vld [vmem:[%s3086_s0 + $0xa0] sm:$0xff] }
  0x20   :  { %253 = vadd.xlane.f32.xlu0 %v252_v31  ;;  %v489_v43 = vsel %vm149_vm0, %v134_v41, 0.0  ;;  %v255_v46 = vsel %vm149_vm0, %v56_v44, 0.0  ;;  %v210_v47 = vsel %vm149_vm0, %v41_v45, 0.0  ;;  %v87_v48 = vld [vmem:[%s3086_s0 + $0x210] sm:$0xff]  ;;  %v73_v49 = vld [vmem:[%s3086_s0 + $0x1a0] sm:$0xff]  ;;  %v104_v53 = vld [vmem:[%s3086_s0 + $0x298] sm:$0xff] }
  0x21   :  { %v348_v50 = vsel %vm149_vm0, %v87_v48, 0.0  ;;  %v306_v51 = vsel %vm149_vm0, %v73_v49, 0.0  ;;  %v117_v52 = vld [vmem:[%s3086_s0 + $0x300] sm:$0xff]  ;;  %v399_v55 = vsel %vm149_vm0, %v104_v53, 0.0  ;;  %v135_v56 = vld [vmem:[%s3086_s0 + $0x390] sm:$0xff]  ;;  %v118_v57 = vld [vmem:[%s3086_s0 + $0x308] sm:$0xff] }
  0x22   :  { %v438_v54 = vsel %vm149_vm0, %v117_v52, 0.0  ;;  %v492_v58 = vsel %vm149_vm0, %v135_v56, 0.0  ;;  %v441_v59 = vsel %vm149_vm0, %v118_v57, 0.0  ;;  %v42_v60 = vld [vmem:[%s3086_s0 + $0xa8] sm:$0xff]  ;;  %v25_v61 = vld [vmem:[%s3086_s0 + $0x20] sm:$0xff]  ;;  %v88_v5 = vld [vmem:[%s3086_s0 + $0x218] sm:$0xff] }
  0x23   :  { %346 = vadd.xlane.f32.xlu1 %v345_v34  ;;  %v213_v62 = vsel %vm149_vm0, %v42_v60, 0.0  ;;  %v162_v63 = vsel %vm149_vm0, %v25_v61, 0.0  ;;  %v74_v0 = vld [vmem:[%s3086_s0 + $0x1a8] sm:$0xff]  ;;  %v57_v1 = vld [vmem:[%s3086_s0 + $0x120] sm:$0xff]  ;;  %v351_v7 = vsel %vm149_vm0, %v88_v5, 0.0  ;;  %v136_v8 = vld [vmem:[%s3086_s0 + $0x398] sm:$0xff] }
  0x24   :  { %343 = vadd.xlane.f32.xlu0 %v342_v35  ;;  %v309_v2 = vsel %vm149_vm0, %v74_v0, 0.0  ;;  %v258_v3 = vsel %vm149_vm0, %v57_v1, 0.0  ;;  %v105_v4 = vld [vmem:[%s3086_s0 + $0x2a0] sm:$0xff]  ;;  %v119_v9 = vld [vmem:[%s3086_s0 + $0x310] sm:$0xff]  ;;  %v495_v10 = vsel %vm149_vm0, %v136_v8, 0.0  ;;  %v26_v13 = vld [vmem:[%s3086_s0 + $0x28] sm:$0xff] }
  0x25   :  { %v402_v6 = vsel %vm149_vm0, %v105_v4, 0.0  ;;  %v444_v11 = vsel %vm149_vm0, %v119_v9, 0.0  ;;  %v43_v12 = vld [vmem:[%s3086_s0 + $0xb0] sm:$0xff]  ;;  %v165_v15 = vsel %vm149_vm0, %v26_v13, 0.0  ;;  %v58_v17 = vld [vmem:[%s3086_s0 + $0x128] sm:$0xff]  ;;  %v89_v21 = vld [vmem:[%s3086_s0 + $0x220] sm:$0xff] }
  0x26   :  { %v216_v14 = vsel %vm149_vm0, %v43_v12, 0.0  ;;  %v75_v16 = vld [vmem:[%s3086_s0 + $0x1b0] sm:$0xff]  ;;  %v261_v19 = vsel %vm149_vm0, %v58_v17, 0.0  ;;  %v106_v20 = vld [vmem:[%s3086_s0 + $0x2a8] sm:$0xff]  ;;  %v354_v23 = vsel %vm149_vm0, %v89_v21, 0.0  ;;  %v137_v24 = vld [vmem:[%s3086_s0 + $0x3a0] sm:$0xff] }
  0x27   :  { %487 = vadd.xlane.f32.xlu1 %v486_v38  ;;  %v312_v18 = vsel %vm149_vm0, %v75_v16, 0.0  ;;  %v405_v22 = vsel %vm149_vm0, %v106_v20, 0.0  ;;  %v120_v25 = vld [vmem:[%s3086_s0 + $0x318] sm:$0xff]  ;;  %v498_v26 = vsel %vm149_vm0, %v137_v24, 0.0  ;;  %v27_v29 = vld [vmem:[%s3086_s0 + $0x30] sm:$0xff]  ;;  %v90_v37 = vld [vmem:[%s3086_s0 + $0x228] sm:$0xff] }
  0x28   :  { %397 = vadd.xlane.f32.xlu0 %v396_v39  ;;  %v447_v27 = vsel %vm149_vm0, %v120_v25, 0.0  ;;  %v44_v28 = vld [vmem:[%s3086_s0 + $0xb8] sm:$0xff]  ;;  %v168_v31 = vsel %vm149_vm0, %v27_v29, 0.0  ;;  %v59_v33 = vld [vmem:[%s3086_s0 + $0x130] sm:$0xff]  ;;  %v357_v39 = vsel %vm149_vm0, %v90_v37, 0.0  ;;  %v138_v40 = vld [vmem:[%s3086_s0 + $0x3a8] sm:$0xff] }
  0x29   :  { %v219_v30 = vsel %vm149_vm0, %v44_v28, 0.0  ;;  %v76_v32 = vld [vmem:[%s3086_s0 + $0x1b8] sm:$0xff]  ;;  %v264_v35 = vsel %vm149_vm0, %v59_v33, 0.0  ;;  %v107_v36 = vld [vmem:[%s3086_s0 + $0x2b0] sm:$0xff]  ;;  %v121_v41 = vld [vmem:[%s3086_s0 + $0x320] sm:$0xff]  ;;  %vm756_vm2 = vcmask 195712  }
  0x2a   :  { %v315_v34 = vsel %vm149_vm0, %v76_v32, 0.0  ;;  %v408_v38 = vsel %vm149_vm0, %v107_v36, 0.0  ;;  %v45_v44 = vld [vmem:[%s3086_s0 + $0xc0] sm:$0xff]  ;;  %v28_v45 = vld [vmem:[%s3086_s0 + $0x38] sm:$0xff]  ;;  %v91_v53 = vld [vmem:[%s3086_s0 + $0x230] sm:$0xff]  ;;  %vm763_vm3 = vcmask 261312  }
  0x2b   :  { %160 = vadd.xlane.f32.xlu1 %v159_v42  ;;  %v501_v42 = vsel %vm149_vm0, %v138_v40, 0.0  ;;  %v77_v48 = vld [vmem:[%s3086_s0 + $0x1c0] sm:$0xff]  ;;  %v60_v49 = vld [vmem:[%s3086_s0 + $0x138] sm:$0xff]  ;;  %v139_v56 = vld [vmem:[%s3086_s0 + $0x3b0] sm:$0xff]  ;;  %vm770_vm4 = vcmask 326912   ;;  %vm777_vm5 = vcmask 392512  }
  0x2c   :  { %490 = vadd.xlane.f32.xlu0 %v489_v43  ;;  %v450_v43 = vsel %vm149_vm0, %v121_v41, 0.0  ;;  %v108_v52 = vld [vmem:[%s3086_s0 + $0x2b8] sm:$0xff]  ;;  %v122_v57 = vld [vmem:[%s3086_s0 + $0x328] sm:$0xff]  ;;  %v29_v61 = vld [vmem:[%s3086_s0 + $0x40] sm:$0xff]  ;;  %vm784_vm6 = vcmask 458112   ;;  %vm791_vm7 = vcmask 523712  }
  0x2d   :  { %v46_v60 = vld [vmem:[%s3086_s0 + $0xc8] sm:$0xff]  ;;  %v61_v1 = vld [vmem:[%s3086_s0 + $0x140] sm:$0xff]  ;;  %v92_v5 = vld [vmem:[%s3086_s0 + $0x238] sm:$0xff]  ;;  %vm798_vm8 = vcmask 589312   ;;  %vm805_vm9 = vcmask 654912   ;;  %vm812_vm10 = vcmask 720512  }
  0x2e   :  { %v78_v0 = vld [vmem:[%s3086_s0 + $0x1c8] sm:$0xff]  ;;  %v109_v4 = vld [vmem:[%s3086_s0 + $0x2c0] sm:$0xff]  ;;  %v140_v8 = vld [vmem:[%s3086_s0 + $0x3b8] sm:$0xff]  ;;  %vm819_vm11 = vcmask 786112   ;;  %vm826_vm12 = vcmask 851712   ;;  %vm833_vm13 = vcmask 917312  }
  0x2f   :  { %256 = vadd.xlane.f32.xlu1 %v255_v46  ;;  %v222_v46 = vsel %vm149_vm0, %v45_v44, 0.0  ;;  %v123_v9 = vld [vmem:[%s3086_s0 + $0x330] sm:$0xff]  ;;  %v62_v20 = vld [vmem:[%s3086_s0 + $0x148] sm:$0xff]  ;;  %v93_v29 = vld [vmem:[%s3086_s0 + $0x240] sm:$0xff]  ;;  %vm840_vm14 = vcmask 982912   ;;  %vm847_vm15 = vcmask 1048512  }
  0x30   :  { %211 = vadd.xlane.f32.xlu0 %v210_v47  ;;  %v171_v47 = vsel %vm149_vm0, %v28_v45, 0.0  ;;  %v456_v12 = vsel %vm149_vm0, %v123_v9, 0.0  ;;  %v47_v13 = vld [vmem:[%s3086_s0 + $0xd0] sm:$0xff]  ;;  %v273_v25 = vsel %vm149_vm0, %v62_v20, 0.0  ;;  %v110_v28 = vld [vmem:[%s3086_s0 + $0x2c8] sm:$0xff]  ;;  %v366_v33 = vsel %vm149_vm0, %v93_v29, 0.0 }
  0x31   :  { %v228_v16 = vsel %vm149_vm0, %v47_v13, 0.0  ;;  %v417_v32 = vsel %vm149_vm0, %v110_v28, 0.0  ;;  %v124_v40 = vld [vmem:[%s3086_s0 + $0x338] sm:$0xff]  ;;  %v49_v29 = vld [vmem:[%s3086_s0 + $0xe0] sm:$0xff]  ;;  %s1765_s12 = smov [#allocation2]  }
  0x32   :  { %s1600_s13 = sshll.u32 %s1765_s12, 4  ;;  %s1601_s13 = int_to_ptr.vmem [resolvable:$true] %s1600_s13 }
  0x33   :  { %349 = vadd.xlane.f32.xlu1 %v348_v50  ;;  %v318_v50 = vsel %vm149_vm0, %v77_v48, 0.0  ;;  %p1746_p1 = scmp.lt.s32.totalorder %s1601_s13, %s1601_s13 }
  0x34   :  { %307 = vadd.xlane.f32.xlu0 %v306_v51  ;;  %v267_v51 = vsel %vm149_vm0, %v60_v49, 0.0 }
  0x37   :  { %439 = vadd.xlane.f32.xlu1 %v438_v54  ;;  %v411_v54 = vsel %vm149_vm0, %v108_v52, 0.0 }
  0x38   :  { %400 = vadd.xlane.f32.xlu0 %v399_v55  ;;  %v360_v55 = vsel %vm149_vm0, %v91_v53, 0.0 }
  0x3b   :  { %493 = vadd.xlane.f32.xlu1 %v492_v58  ;;  %v504_v58 = vsel %vm149_vm0, %v139_v56, 0.0 }
  0x3c   :  { %442 = vadd.xlane.f32.xlu0 %v441_v59  ;;  %v453_v59 = vsel %vm149_vm0, %v122_v57, 0.0 }
  0x3f   :  { %214 = vadd.xlane.f32.xlu1 %v213_v62  ;;  %v225_v62 = vsel %vm149_vm0, %v46_v60, 0.0 }
  0x40   :  { %163 = vadd.xlane.f32.xlu0 %v162_v63  ;;  %v174_v63 = vsel %vm149_vm0, %v29_v61, 0.0 }
  0x43   :  { %310 = vadd.xlane.f32.xlu1 %v309_v2  ;;  %v321_v2 = vsel %vm149_vm0, %v78_v0, 0.0 }
  0x44   :  { %259 = vadd.xlane.f32.xlu0 %v258_v3  ;;  %v270_v3 = vsel %vm149_vm0, %v61_v1, 0.0 }
  0x47   :  { %403 = vadd.xlane.f32.xlu1 %v402_v6  ;;  %v414_v6 = vsel %vm149_vm0, %v109_v4, 0.0  ;;  %v111_v4 = vld [vmem:[%s3086_s0 + $0x2d0] sm:$0xff] }
  0x48   :  { %352 = vadd.xlane.f32.xlu0 %v351_v7  ;;  %v363_v7 = vsel %vm149_vm0, %v92_v5, 0.0  ;;  %v94_v5 = vld [vmem:[%s3086_s0 + $0x248] sm:$0xff] }
  0x4b   :  { %496 = vadd.xlane.f32.xlu1 %v495_v10  ;;  %v600_v10 = vlaneseq }
  0x4c   :  { %445 = vadd.xlane.f32.xlu0 %v444_v11  ;;  %v507_v11 = vsel %vm149_vm0, %v140_v8, 0.0 }
  0x4f   :  { %217 = vadd.xlane.f32.xlu1 %v216_v14  ;;  %v30_v14 = vld [vmem:[%s3086_s0 + $0x48] sm:$0xff] }
  0x50   :  { %166 = vadd.xlane.f32.xlu0 %v165_v15  ;;  %v2082_v15 = vand.u32 127, %v600_v10  ;;  %v177_v17 = vsel %vm149_vm0, %v30_v14, 0.0 }
  0x52   :  { %v744_v21 = vadd.s32 4294967288, %v2082_v15 }
  0x53   :  { %313 = vadd.xlane.f32.xlu1 %v312_v18  ;;  %v2086_v18 = vshrl.u32 %v600_v10, 7 }
  0x54   :  { %262 = vadd.xlane.f32.xlu0 %v261_v19  ;;  %v79_v19 = vld [vmem:[%s3086_s0 + $0x1d0] sm:$0xff] }
  0x55   :  { %v324_v24 = vsel %vm149_vm0, %v79_v19, 0.0  ;;  %v125_v19 = vld [vmem:[%s3086_s0 + $0x340] sm:$0xff] }
  0x57   :  { %406 = vadd.xlane.f32.xlu1 %v405_v22 }
  0x58   :  { %355 = vadd.xlane.f32.xlu0 %v354_v23 }
  0x5b   :  { %499 = vadd.xlane.f32.xlu1 %v498_v26  ;;  %v2099_v26 = vsub.s32 %v2082_v15, %v2086_v18 }
  0x5c   :  { %448 = vadd.xlane.f32.xlu0 %v447_v27  ;;  %v2102_v27 = vsub.s32 %v744_v21, %v2086_v18 }
  0x5f   :  { %220 = vadd.xlane.f32.xlu1 %v219_v30 }
  0x60   :  { %169 = vadd.xlane.f32.xlu0 %v168_v31 }
  0x63   :  { %316 = vadd.xlane.f32.xlu1 %v315_v34  ;;  %v751_v34 = vadd.s32 4294967280, %v2082_v15 }
  0x64   :  { %265 = vadd.xlane.f32.xlu0 %v264_v35 }
  0x65   :  { %v2130_v49 = vsub.s32 %v751_v34, %v2086_v18 }
  0x67   :  { %409 = vadd.xlane.f32.xlu1 %v408_v38 }
  0x68   :  { %358 = vadd.xlane.f32.xlu0 %v357_v39  ;;  %v141_v39 = vld [vmem:[%s3086_s0 + $0x3c0] sm:$0xff] }
  0x69   :  { %v510_v45 = vsel %vm149_vm0, %v141_v39, 0.0  ;;  %v81_v39 = vld [vmem:[%s3086_s0 + $0x1e0] sm:$0xff] }
  0x6b   :  { %502 = vadd.xlane.f32.xlu1 %v501_v42 }
  0x6c   :  { %451 = vadd.xlane.f32.xlu0 %v450_v43 }
  0x6f   :  { %223 = vadd.xlane.f32.xlu1 %v222_v46  ;;  %v459_v46 = vsel %vm149_vm0, %v124_v40, 0.0  ;;  %v64_v40 = vld [vmem:[%s3086_s0 + $0x158] sm:$0xff] }
  0x70   :  { %172 = vadd.xlane.f32.xlu0 %v171_v47 }
  0x73   :  { %319 = vadd.xlane.f32.xlu1 %v318_v50  ;;  %v48_v50 = vld [vmem:[%s3086_s0 + $0xd8] sm:$0xff] }
  0x74   :  { %268 = vadd.xlane.f32.xlu0 %v267_v51  ;;  %v31_v51 = vld [vmem:[%s3086_s0 + $0x50] sm:$0xff] }
  0x75   :  { %v180_v56 = vsel %vm149_vm0, %v31_v51, 0.0  ;;  %v95_v51 = vld [vmem:[%s3086_s0 + $0x250] sm:$0xff] }
  0x77   :  { %412 = vadd.xlane.f32.xlu1 %v411_v54 }
  0x78   :  { %361 = vadd.xlane.f32.xlu0 %v360_v55  ;;  %v231_v55 = vsel %vm149_vm0, %v48_v50, 0.0  ;;  %v112_v50 = vld [vmem:[%s3086_s0 + $0x2d8] sm:$0xff] }
  0x7b   :  { %505 = vadd.xlane.f32.xlu1 %v504_v58  ;;  %v80_v58 = vld [vmem:[%s3086_s0 + $0x1d8] sm:$0xff] }
  0x7c   :  { %454 = vadd.xlane.f32.xlu0 %v453_v59  ;;  %v63_v59 = vld [vmem:[%s3086_s0 + $0x150] sm:$0xff] }
  0x7d   :  { %v276_v0 = vsel %vm149_vm0, %v63_v59, 0.0  ;;  %v126_v59 = vld [vmem:[%s3086_s0 + $0x348] sm:$0xff] }
  0x7f   :  { %226 = vadd.xlane.f32.xlu1 %v225_v62 }
  0x80   :  { %175 = vadd.xlane.f32.xlu0 %v174_v63  ;;  %v327_v63 = vsel %vm149_vm0, %v80_v58, 0.0  ;;  %v143_v58 = vld [vmem:[%s3086_s0 + $0x3d0] sm:$0xff] }
  0x83   :  { %322 = vadd.xlane.f32.xlu1 %v321_v2 }
  0x84   :  { %271 = vadd.xlane.f32.xlu0 %v270_v3 }
  0x87   :  { %415 = vadd.xlane.f32.xlu1 %v414_v6  ;;  %v758_v6 = vadd.s32 4294967272, %v2082_v15 }
  0x88   :  { %364 = vadd.xlane.f32.xlu0 %v363_v7 }
  0x8b   :  { %508 = vadd.xlane.f32.xlu1 %v507_v11  ;;  %v420_v11 = vsel %vm149_vm0, %v111_v4, 0.0 }
  0x8c   :  { %457 = vadd.xlane.f32.xlu0 %v456_v12  ;;  %v369_v12 = vsel %vm149_vm0, %v94_v5, 0.0 }
  0x8f   :  { %229 = vadd.xlane.f32.xlu1 %v228_v16  ;;  %v2168_v16 = vsub.s32 %v758_v6, %v2086_v18  ;;  %v50_v6 = vld [vmem:[%s3086_s0 + $0xe8] sm:$0xff] }
  0x90   :  { %178 = vadd.xlane.f32.xlu0 %v177_v17  ;;  %v296_v22 = vpop.xlane.xlu1 %295  ;;  %v142_v17 = vld [vmem:[%s3086_s0 + $0x3c8] sm:$0xff] }
  0x91   :  { %v200_v23 = vpop.xlane.xlu0 %199  ;;  %v1010_v35 = vrot.slane %v296_v22, %v2099_v26 }
  0x92   :  { %v852_v36 = vrot.slane %v200_v23, %v2099_v26  ;;  %v513_v23 = vsel %vm149_vm0, %v142_v17, 0.0 }
  0x93   :  { %325 = vadd.xlane.f32.xlu1 %v324_v24  ;;  %v462_v24 = vsel %vm149_vm0, %v125_v19, 0.0  ;;  %v82_v19 = vld [vmem:[%s3086_s0 + $0x1e8] sm:$0xff] }
  0x94   :  { %274 = vadd.xlane.f32.xlu0 %v273_v25  ;;  %v299_v30 = vpop.xlane.xlu1 %298 }
  0x95   :  { %v203_v31 = vpop.xlane.xlu0 %202  ;;  %v1014_v37 = vrot.slane %v299_v30, %v2102_v27  ;;  %v32_v30 = vld [vmem:[%s3086_s0 + $0x58] sm:$0xff] }
  0x96   :  { %v856_v38 = vrot.slane %v203_v31, %v2102_v27 }
  0x97   :  { %v1015_v41 = vsel %vm749_vm1, %v1014_v37, %v1010_v35  ;;  %418 = vadd.xlane.f32.xlu1 %v417_v32  ;;  %v234_v35 = vsel %vm149_vm0, %v49_v29, 0.0 }
  0x98   :  { %v857_v42 = vsel %vm749_vm1, %v856_v38, %v852_v36  ;;  %367 = vadd.xlane.f32.xlu0 %v366_v33  ;;  %v155_v43 = vpop.xlane.xlu1 %154  ;;  %v183_v36 = vsel %vm149_vm0, %v32_v30, 0.0 }
  0x99   :  { %v152_v44 = vpop.xlane.xlu0 %151  ;;  %v748_v47 = vrot.slane %v155_v43, %v2102_v27 }
  0x9a   :  { %v743_v48 = vrot.slane %v152_v44, %v2099_v26 }
  0x9b   :  { %511 = vadd.xlane.f32.xlu1 %v510_v45  ;;  %v330_v45 = vsel %vm149_vm0, %v81_v39, 0.0 }
  0x9c   :  { %v750_v52 = vsel %vm749_vm1, %v748_v47, %v743_v48  ;;  %460 = vadd.xlane.f32.xlu0 %v459_v46  ;;  %v248_v53 = vpop.xlane.xlu1 %247  ;;  %v279_v46 = vsel %vm149_vm0, %v64_v40, 0.0  ;;  %v144_v40 = vld [vmem:[%s3086_s0 + $0x3d8] sm:$0xff] }
  0x9d   :  { %v206_v54 = vpop.xlane.xlu0 %205  ;;  %v931_v1 = vrot.slane %v248_v53, %v2099_v26 }
  0x9e   :  { %v861_v57 = vrot.slane %v206_v54, %v2130_v49 }
  0x9f   :  { %232 = vadd.xlane.f32.xlu1 %v231_v55  ;;  %v423_v55 = vsel %vm149_vm0, %v112_v50, 0.0 }
  0xa0   :  { %v862_v60 = vsel %vm756_vm2, %v861_v57, %v857_v42  ;;  %181 = vadd.xlane.f32.xlu0 %v180_v56  ;;  %v302_v61 = vpop.xlane.xlu1 %301  ;;  %v372_v56 = vsel %vm149_vm0, %v95_v51, 0.0 }
  0xa1   :  { %v251_v62 = vpop.xlane.xlu0 %250  ;;  %v1019_v2 = vrot.slane %v302_v61, %v2130_v49 }
  0xa2   :  { %v935_v3 = vrot.slane %v251_v62, %v2102_v27 }
  0xa3   :  { %v1020_v7 = vsel %vm756_vm2, %v1019_v2, %v1015_v41  ;;  %328 = vadd.xlane.f32.xlu1 %v327_v63 }
  0xa4   :  { %v936_v8 = vsel %vm749_vm1, %v935_v3, %v931_v1  ;;  %277 = vadd.xlane.f32.xlu0 %v276_v0  ;;  %v395_v9 = vpop.xlane.xlu1 %394  ;;  %v516_v0 = vsel %vm149_vm0, %v143_v58, 0.0  ;;  %v465_v1 = vsel %vm149_vm0, %v126_v59, 0.0 }
  0xa5   :  { %v392_v10 = vpop.xlane.xlu0 %391  ;;  %v1172_v13 = vrot.slane %v395_v9, %v2102_v27 }
  0xa6   :  { %v1168_v14 = vrot.slane %v392_v10, %v2099_v26 }
  0xa7   :  { %421 = vadd.xlane.f32.xlu1 %v420_v11 }
  0xa8   :  { %v1173_v20 = vsel %vm749_vm1, %v1172_v13, %v1168_v14  ;;  %370 = vadd.xlane.f32.xlu0 %v369_v12  ;;  %v209_v21 = vpop.xlane.xlu1 %208  ;;  %v237_v12 = vsel %vm149_vm0, %v50_v6, 0.0 }
  0xa9   :  { %v158_v22 = vpop.xlane.xlu0 %157  ;;  %v866_v25 = vrot.slane %v209_v21, %v2168_v16 }
  0xaa   :  { %v755_v28 = vrot.slane %v158_v22, %v2130_v49 }
  0xab   :  { %v2188_v31 = vsel %vm763_vm3, %v866_v25, %v862_v60  ;;  %514 = vadd.xlane.f32.xlu1 %v513_v23  ;;  %v765_v60 = vadd.s32 4294967264, %v2082_v15  ;;  %v333_v25 = vsel %vm149_vm0, %v82_v19, 0.0 }
  0xac   :  { %v757_v32 = vsel %vm756_vm2, %v755_v28, %v750_v52  ;;  %463 = vadd.xlane.f32.xlu0 %v462_v24  ;;  %v305_v33 = vpop.xlane.xlu1 %304 }
  0xad   :  { %v254_v34 = vpop.xlane.xlu0 %253  ;;  %v1024_v37 = vrot.slane %v305_v33, %v2168_v16  ;;  %v2233_v5 = vsub.s32 %v765_v60, %v2086_v18 }
  0xae   :  { %v940_v38 = vrot.slane %v254_v34, %v2130_v49 }
  0xaf   :  { %v2202_v41 = vsel %vm763_vm3, %v1024_v37, %v1020_v7  ;;  %235 = vadd.xlane.f32.xlu1 %v234_v35  ;;  %v33_v7 = vld [vmem:[%s3086_s0 + $0x60] sm:$0xff] }
  0xb0   :  { %v941_v42 = vsel %vm756_vm2, %v940_v38, %v936_v8  ;;  %184 = vadd.xlane.f32.xlu0 %v183_v36  ;;  %v347_v43 = vpop.xlane.xlu1 %346  ;;  %v186_v13 = vsel %vm149_vm0, %v33_v7, 0.0 }
  0xb1   :  { %v344_v44 = vpop.xlane.xlu0 %343  ;;  %v1093_v47 = vrot.slane %v347_v43, %v2102_v27 }
  0xb2   :  { %v1089_v48 = vrot.slane %v344_v44, %v2099_v26 }
  0xb3   :  { %331 = vadd.xlane.f32.xlu1 %v330_v45 }
  0xb4   :  { %v1094_v52 = vsel %vm749_vm1, %v1093_v47, %v1089_v48  ;;  %280 = vadd.xlane.f32.xlu0 %v279_v46  ;;  %v488_v53 = vpop.xlane.xlu1 %487  ;;  %v519_v46 = vsel %vm149_vm0, %v144_v40, 0.0 }
  0xb5   :  { %v398_v54 = vpop.xlane.xlu0 %397  ;;  %v1326_v2 = vrot.slane %v488_v53, %v2099_v26  ;;  %v51_v53 = vld [vmem:[%s3086_s0 + $0xf0] sm:$0xff] }
  0xb6   :  { %v1177_v57 = vrot.slane %v398_v54, %v2130_v49  ;;  %v34_v54 = vld [vmem:[%s3086_s0 + $0x68] sm:$0xff] }
  0xb7   :  { %424 = vadd.xlane.f32.xlu1 %v423_v55  ;;  %v189_v58 = vsel %vm149_vm0, %v34_v54, 0.0  ;;  %v52_v54 = vld [vmem:[%s3086_s0 + $0xf8] sm:$0xff] }
  0xb8   :  { %v1178_v61 = vsel %vm756_vm2, %v1177_v57, %v1173_v20  ;;  %373 = vadd.xlane.f32.xlu0 %v372_v56  ;;  %v161_v62 = vpop.xlane.xlu1 %160  ;;  %v65_v20 = vld [vmem:[%s3086_s0 + $0x160] sm:$0xff]  ;;  %v240_v57 = vsel %vm149_vm0, %v51_v53, 0.0 }
  0xb9   :  { %v491_v63 = vpop.xlane.xlu0 %490  ;;  %v762_v3 = vrot.slane %v161_v62, %v2168_v16  ;;  %v282_v28 = vsel %vm149_vm0, %v65_v20, 0.0  ;;  %v66_v62 = vld [vmem:[%s3086_s0 + $0x168] sm:$0xff] }
  0xba   :  { %v1330_v4 = vrot.slane %v491_v63, %v2102_v27  ;;  %v285_v7 = vsel %vm149_vm0, %v66_v62, 0.0 }
  0xbb   :  { %v2242_v8 = vsel %vm763_vm3, %v762_v3, %v757_v32  ;;  %517 = vadd.xlane.f32.xlu1 %v516_v0  ;;  %v113_v32 = vld [vmem:[%s3086_s0 + $0x2e0] sm:$0xff] }
  0xbc   :  { %v1331_v9 = vsel %vm749_vm1, %v1330_v4, %v1326_v2  ;;  %466 = vadd.xlane.f32.xlu0 %v465_v1  ;;  %v257_v10 = vpop.xlane.xlu1 %256  ;;  %v426_v37 = vsel %vm149_vm0, %v113_v32, 0.0  ;;  %v535_v1 = vld [vmem:[%s3087_s1 + $0x8] sm:$0xff]  ;;  %v537_v2 = vld [vmem:[%s3087_s1 + $0x18] sm:$0xff]  ;;  %v540_v32 = vld [vmem:[%s3087_s1 + $0x30] sm:$0xff] }
  0xbd   :  { %v212_v11 = vpop.xlane.xlu0 %211  ;;  %v945_v14 = vrot.slane %v257_v10, %v2168_v16  ;;  %v536_v10 = vld [vmem:[%s3087_s1 + $0x10] sm:$0xff] }
  0xbe   :  { %v871_v17 = vrot.slane %v212_v11, %v2233_v5 }
  0xbf   :  { %v2256_v21 = vsel %vm763_vm3, %v945_v14, %v941_v42  ;;  %238 = vadd.xlane.f32.xlu1 %v237_v12  ;;  %v127_v42 = vld [vmem:[%s3086_s0 + $0x350] sm:$0xff]  ;;  %v97_v14 = vld [vmem:[%s3086_s0 + $0x260] sm:$0xff] }
  0xc0   :  { %v872_v22 = vsel %vm770_vm4, %v871_v17, %v2188_v31  ;;  %187 = vadd.xlane.f32.xlu0 %v186_v13  ;;  %v350_v23 = vpop.xlane.xlu1 %349  ;;  %v96_v31 = vld [vmem:[%s3086_s0 + $0x258] sm:$0xff]  ;;  %v468_v47 = vsel %vm149_vm0, %v127_v42, 0.0  ;;  %v114_v13 = vld [vmem:[%s3086_s0 + $0x2e8] sm:$0xff] }
  0xc1   :  { %v308_v24 = vpop.xlane.xlu0 %307  ;;  %v1098_v29 = vrot.slane %v350_v23, %v2130_v49  ;;  %v375_v38 = vsel %vm149_vm0, %v96_v31, 0.0  ;;  %v541_v23 = vld [vmem:[%s3087_s1 + $0x38] sm:$0xff]  ;;  %v543_v42 = vld [vmem:[%s3087_s1 + $0x48] sm:$0xff] }
  0xc2   :  { %v1029_v30 = vrot.slane %v308_v24, %v2233_v5 }
  0xc3   :  { %v2271_v33 = vsel %vm756_vm2, %v1098_v29, %v1094_v52  ;;  %334 = vadd.xlane.f32.xlu1 %v333_v25  ;;  %v378_v29 = vsel %vm149_vm0, %v97_v14, 0.0 }
  0xc4   :  { %v1030_v34 = vsel %vm770_vm4, %v1029_v30, %v2202_v41  ;;  %283 = vadd.xlane.f32.xlu0 %v282_v28  ;;  %v440_v35 = vpop.xlane.xlu1 %439  ;;  %v772_v41 = vadd.s32 4294967256, %v2082_v15  ;;  %v429_v28 = vsel %vm149_vm0, %v114_v13, 0.0 }
  0xc5   :  { %v401_v36 = vpop.xlane.xlu0 %400  ;;  %v1247_v48 = vrot.slane %v440_v35, %v2099_v26  ;;  %v145_v35 = vld [vmem:[%s3086_s0 + $0x3e0] sm:$0xff] }
  0xc6   :  { %v1182_v39 = vrot.slane %v401_v36, %v2168_v16  ;;  %v2294_v52 = vsub.s32 %v772_v41, %v2086_v18  ;;  %v128_v36 = vld [vmem:[%s3086_s0 + $0x358] sm:$0xff] }
  0xc7   :  { %427 = vadd.xlane.f32.xlu1 %v426_v37  ;;  %v779_v37 = vadd.s32 4294967248, %v2082_v15  ;;  %v545_v41 = vld [vmem:[%s3087_s1 + $0x58] sm:$0xff] }
  0xc8   :  { %v2286_v43 = vsel %vm763_vm3, %v1182_v39, %v1178_v61  ;;  %376 = vadd.xlane.f32.xlu0 %v375_v38  ;;  %v494_v44 = vpop.xlane.xlu1 %493  ;;  %v83_v61 = vld [vmem:[%s3086_s0 + $0x1f0] sm:$0xff] }
  0xc9   :  { %v443_v45 = vpop.xlane.xlu0 %442  ;;  %v1335_v50 = vrot.slane %v494_v44, %v2130_v49  ;;  %v336_v6 = vsel %vm149_vm0, %v83_v61, 0.0  ;;  %v2402_v53 = vsub.s32 %v779_v37, %v2086_v18 }
  0xca   :  { %v1251_v51 = vrot.slane %v443_v45, %v2102_v27 }
  0xcb   :  { %v2303_v55 = vsel %vm756_vm2, %v1335_v50, %v1331_v9  ;;  %520 = vadd.xlane.f32.xlu1 %v519_v46  ;;  %v1644_v9 = vpack.c.bf16 %v537_v2, %v535_v1  ;;  %v522_v46 = vsel %vm149_vm0, %v145_v35, 0.0  ;;  %v546_v1 = vld [vmem:[%s3087_s1 + $0x60] sm:$0xff]  ;;  %v548_v2 = vld [vmem:[%s3087_s1 + $0x70] sm:$0xff] }
  0xcc   :  { %v2306_v26 = vsel %vm749_vm1, %v1251_v51, %v1247_v48  ;;  %469 = vadd.xlane.f32.xlu0 %v468_v47  ;;  %v215_v27 = vpop.xlane.xlu1 %214  ;;  %v1652_v47 = vpack.c.bf16 %v545_v41, %v543_v42  ;;  %v544_v48 = vld [vmem:[%s3087_s1 + $0x50] sm:$0xff]  ;;  %vm1404_vm1 = vcmask 1042434  }
  0xcd   :  { %v164_v56 = vpop.xlane.xlu0 %163  ;;  %v876_v59 = vrot.slane %v215_v27, %v2294_v52  ;;  %1645 = vmatprep.subr.bf16.mxu0 %v1644_v9  ;;  %v35_v27 = vld [vmem:[%s3086_s0 + $0x70] sm:$0xff]  ;;  %v1658_v9 = vpack.c.bf16 %v548_v2, %v546_v1 }
  0xce   :  { %v769_v60 = vrot.slane %v164_v56, %v2233_v5  ;;  %v192_v62 = vsel %vm149_vm0, %v35_v27, 0.0  ;;  %v556_v42 = vld [vmem:[%s3087_s1 + $0xb0] sm:$0xff] }
  0xcf   :  { %v2319_v63 = vsel %vm777_vm5, %v876_v59, %v872_v22  ;;  %241 = vadd.xlane.f32.xlu1 %v240_v57  ;;  %v539_v22 = vld [vmem:[%s3087_s1 + $0x28] sm:$0xff]  ;;  %v549_v59 = vld [vmem:[%s3087_s1 + $0x78] sm:$0xff] }
  0xd0   :  { %v2323_v0 = vsel %vm770_vm4, %v769_v60, %v2242_v8  ;;  %190 = vadd.xlane.f32.xlu0 %v189_v58  ;;  %v311_v3 = vpop.xlane.xlu1 %310  ;;  %v534_v8 = vld [vmem:[%s3087_s1] sm:$0xff]  ;;  %v1648_v30 = vpack.c.bf16 %v541_v23, %v539_v22  ;;  %v547_v58 = vld [vmem:[%s3087_s1 + $0x68] sm:$0xff]  ;;  %v552_v23 = vld [vmem:[%s3087_s1 + $0x90] sm:$0xff] }
  0xd1   :  { %v260_v4 = vpop.xlane.xlu0 %259  ;;  %v1034_v11 = vrot.slane %v311_v3, %v2294_v52  ;;  %v1646_v17 = vpack.c.bf16 %v536_v10, %v534_v8 }
  0xd2   :  { %v950_v12 = vrot.slane %v260_v4, %v2233_v5 }
  0xd3   :  { %v2348_v19 = vsel %vm777_vm5, %v1034_v11, %v1030_v34  ;;  %337 = vadd.xlane.f32.xlu1 %v336_v6  ;;  %1647 = vmatpush1.bf16.msra.mxu0 %v1646_v17  ;;  %v84_v6 = vld [vmem:[%s3086_s0 + $0x1f8] sm:$0xff]  ;;  %v551_v11 = vld [vmem:[%s3087_s1 + $0x88] sm:$0xff] }
  0xd4   :  { %v2352_v20 = vsel %vm770_vm4, %v950_v12, %v2256_v21  ;;  %286 = vadd.xlane.f32.xlu0 %v285_v7  ;;  %v404_v24 = vpop.xlane.xlu1 %403  ;;  %v538_v21 = vld [vmem:[%s3087_s1 + $0x20] sm:$0xff]  ;;  %1649 = vmatprep.subr.bf16.mxu0 %v1648_v30  ;;  %v67_v7 = vld [vmem:[%s3086_s0 + $0x170] sm:$0xff]  ;;  %v553_v12 = vld [vmem:[%s3087_s1 + $0x98] sm:$0xff]  ;;  %v339_v17 = vsel %vm149_vm0, %v84_v6, 0.0 }
  0xd5   :  { %v353_v25 = vpop.xlane.xlu0 %352  ;;  %v1187_v31 = vrot.slane %v404_v24, %v2233_v5  ;;  %v1650_v38 = vpack.c.bf16 %v540_v32, %v538_v21  ;;  %v1660_v22 = vpack.c.bf16 %v553_v12, %v551_v11  ;;  %v562_v11 = vld [vmem:[%s3087_s1 + $0xe0] sm:$0xff]  ;;  %v564_v12 = vld [vmem:[%s3087_s1 + $0xf0] sm:$0xff] }
  0xd6   :  { %v1103_v34 = vrot.slane %v353_v25, %v2168_v16 }
  0xd7   :  { %v2379_v39 = vsel %vm770_vm4, %v1187_v31, %v2286_v43  ;;  %430 = vadd.xlane.f32.xlu1 %v429_v28  ;;  %v471_v43 = vsel %vm149_vm0, %v128_v36, 0.0  ;;  %1651 = vmatpush1.bf16.msra.mxu0 %v1650_v38  ;;  %v115_v28 = vld [vmem:[%s3086_s0 + $0x2f0] sm:$0xff]  ;;  %v555_v31 = vld [vmem:[%s3087_s1 + $0xa8] sm:$0xff] }
  0xd8   :  { %v2383_v40 = vsel %vm763_vm3, %v1103_v34, %v2271_v33  ;;  %379 = vadd.xlane.f32.xlu0 %v378_v29  ;;  %v497_v44 = vpop.xlane.xlu1 %496  ;;  %v542_v33 = vld [vmem:[%s3087_s1 + $0x40] sm:$0xff]  ;;  %1653 = vmatprep.subr.bf16.mxu0 %v1652_v47  ;;  %v98_v29 = vld [vmem:[%s3086_s0 + $0x268] sm:$0xff]  ;;  %v557_v34 = vld [vmem:[%s3087_s1 + $0xb8] sm:$0xff]  ;;  %v432_v37 = vsel %vm149_vm0, %v115_v28, 0.0 }
  0xd9   :  { %v446_v45 = vpop.xlane.xlu0 %445  ;;  %v1340_v50 = vrot.slane %v497_v44, %v2168_v16  ;;  %v1654_v56 = vpack.c.bf16 %v544_v48, %v542_v33  ;;  %v1664_v38 = vpack.c.bf16 %v557_v34, %v555_v31  ;;  %v568_v34 = vld [vmem:[%s3087_s1 + $0x110] sm:$0xff] }
  0xda   :  { %v1256_v51 = vrot.slane %v446_v45, %v2130_v49  ;;  %v146_v45 = vld [vmem:[%s3086_s0 + $0x3e8] sm:$0xff] }
  0xdb   :  { %v2412_v57 = vsel %vm763_vm3, %v1340_v50, %v2303_v55  ;;  %523 = vadd.xlane.f32.xlu1 %v522_v46  ;;  %v243_v55 = vsel %vm149_vm0, %v52_v54, 0.0  ;;  %1655 = vmatpush1.bf16.msra.mxu0 %v1654_v56  ;;  %v129_v46 = vld [vmem:[%s3086_s0 + $0x360] sm:$0xff]  ;;  %v559_v50 = vld [vmem:[%s3087_s1 + $0xc8] sm:$0xff]  ;;  %v525_v56 = vsel %vm149_vm0, %v146_v45, 0.0 }
  0xdc   :  { %v2416_v49 = vsel %vm756_vm2, %v1256_v51, %v2306_v26  ;;  %472 = vadd.xlane.f32.xlu0 %v471_v43  ;;  %v218_v60 = vpop.xlane.xlu1 %217  ;;  %v1656_v26 = vpack.c.bf16 %v549_v59, %v547_v58  ;;  %v786_v43 = vadd.s32 4294967240, %v2082_v15  ;;  %v561_v51 = vld [vmem:[%s3087_s1 + $0xd8] sm:$0xff]  ;;  %v560_v59 = vld [vmem:[%s3087_s1 + $0xd0] sm:$0xff]  ;;  %vm1406_vm2 = vcmask 1043459  }
  0xdd   :  { %v167_v61 = vpop.xlane.xlu0 %166  ;;  %v881_v3 = vrot.slane %v218_v60, %v2402_v53  ;;  %v1668_v58 = vpack.c.bf16 %v561_v51, %v559_v50  ;;  %v572_v50 = vld [vmem:[%s3087_s1 + $0x130] sm:$0xff] }
  0xde   :  { %v776_v4 = vrot.slane %v167_v61, %v2294_v52  ;;  %1657 = vmatprep.subr.bf16.mxu0 %v1656_v26  ;;  %v36_v26 = vld [vmem:[%s3086_s0 + $0x78] sm:$0xff] }
  0xdf   :  { %v2442_v8 = vsel %vm784_vm6, %v881_v3, %v2319_v63  ;;  %244 = vadd.xlane.f32.xlu1 %v243_v55  ;;  %v288_v63 = vsel %vm149_vm0, %v67_v7, 0.0  ;;  %1659 = vmatpush1.bf16.msra.mxu0 %v1658_v9  ;;  %v2526_v55 = vsub.s32 %v786_v43, %v2086_v18  ;;  %v563_v3 = vld [vmem:[%s3087_s1 + $0xe8] sm:$0xff]  ;;  %v195_v9 = vsel %vm149_vm0, %v36_v26, 0.0 }
  0xe0   :  { %v2446_v10 = vsel %vm777_vm5, %v776_v4, %v2323_v0  ;;  %193 = vadd.xlane.f32.xlu0 %v192_v62  ;;  %v314_v13 = vpop.xlane.xlu1 %313  ;;  %v550_v0 = vld [vmem:[%s3087_s1 + $0x80] sm:$0xff]  ;;  %1661 = vmatprep.subr.bf16.mxu0 %v1660_v22  ;;  %v68_v62 = vld [vmem:[%s3086_s0 + $0x178] sm:$0xff]  ;;  %v1674_v22 = vpack.c.bf16 %v564_v12, %v562_v11 }
  0xe1   :  { %v263_v14 = vpop.xlane.xlu0 %262  ;;  %v1039_v24 = vrot.slane %v314_v13, %v2402_v53  ;;  %v1662_v30 = vpack.c.bf16 %v552_v23, %v550_v0  ;;  %v565_v4 = vld [vmem:[%s3087_s1 + $0xf8] sm:$0xff] }
  0xe2   :  { %v955_v25 = vrot.slane %v263_v14, %v2294_v52 }
  0xe3   :  { %v2472_v21 = vsel %vm784_vm6, %v1039_v24, %v2348_v19  ;;  %340 = vadd.xlane.f32.xlu1 %v339_v17  ;;  %v381_v19 = vsel %vm149_vm0, %v98_v29, 0.0  ;;  %1663 = vmatpush1.bf16.msra.mxu0 %v1662_v30  ;;  %v116_v17 = vld [vmem:[%s3086_s0 + $0x2f8] sm:$0xff]  ;;  %v567_v24 = vld [vmem:[%s3087_s1 + $0x108] sm:$0xff] }
  0xe4   :  { %v2476_v32 = vsel %vm777_vm5, %v955_v25, %v2352_v20  ;;  %289 = vadd.xlane.f32.xlu0 %v288_v63  ;;  %v407_v35 = vpop.xlane.xlu1 %406  ;;  %v554_v20 = vld [vmem:[%s3087_s1 + $0xa0] sm:$0xff]  ;;  %1665 = vmatprep.subr.bf16.mxu0 %v1664_v38  ;;  %v99_v63 = vld [vmem:[%s3086_s0 + $0x270] sm:$0xff]  ;;  %v569_v25 = vld [vmem:[%s3087_s1 + $0x118] sm:$0xff]  ;;  %v435_v30 = vsel %vm149_vm0, %v116_v17, 0.0 }
  0xe5   :  { %v356_v36 = vpop.xlane.xlu0 %355  ;;  %v1192_v41 = vrot.slane %v407_v35, %v2294_v52  ;;  %v1666_v47 = vpack.c.bf16 %v556_v42, %v554_v20  ;;  %v1676_v31 = vpack.c.bf16 %v569_v25, %v567_v24  ;;  %v578_v24 = vld [vmem:[%s3087_s1 + $0x160] sm:$0xff]  ;;  %v580_v25 = vld [vmem:[%s3087_s1 + $0x170] sm:$0xff] }
  0xe6   :  { %v1108_v44 = vrot.slane %v356_v36, %v2233_v5 }
  0xe7   :  { %v2503_v33 = vsel %vm777_vm5, %v1192_v41, %v2379_v39  ;;  %433 = vadd.xlane.f32.xlu1 %v432_v37  ;;  %v474_v39 = vsel %vm149_vm0, %v129_v46, 0.0  ;;  %1667 = vmatpush1.bf16.msra.mxu0 %v1666_v47  ;;  %v147_v37 = vld [vmem:[%s3086_s0 + $0x3f0] sm:$0xff]  ;;  %v571_v41 = vld [vmem:[%s3087_s1 + $0x128] sm:$0xff] }
  0xe8   :  { %v2507_v48 = vsel %vm770_vm4, %v1108_v44, %v2383_v40  ;;  %382 = vadd.xlane.f32.xlu0 %v381_v19  ;;  %v500_v54 = vpop.xlane.xlu1 %499  ;;  %v558_v40 = vld [vmem:[%s3087_s1 + $0xc0] sm:$0xff]  ;;  %1669 = vmatprep.subr.bf16.mxu0 %v1668_v58  ;;  %v130_v19 = vld [vmem:[%s3086_s0 + $0x368] sm:$0xff]  ;;  %v573_v44 = vld [vmem:[%s3087_s1 + $0x138] sm:$0xff]  ;;  %v528_v43 = vsel %vm149_vm0, %v147_v37, 0.0 }
  0xe9   :  { %v449_v27 = vpop.xlane.xlu0 %448  ;;  %v1345_v60 = vrot.slane %v500_v54, %v2233_v5  ;;  %v1670_v1 = vpack.c.bf16 %v560_v59, %v558_v40  ;;  %v1680_v47 = vpack.c.bf16 %v573_v44, %v571_v41 }
  0xea   :  { %v1261_v61 = vrot.slane %v449_v27, %v2168_v16  ;;  %v131_v27 = vld [vmem:[%s3086_s0 + $0x370] sm:$0xff] }
  0xeb   :  { %v2536_v2 = vsel %vm770_vm4, %v1345_v60, %v2412_v57  ;;  %526 = vadd.xlane.f32.xlu1 %v525_v56  ;;  %v291_v57 = vsel %vm149_vm0, %v68_v62, 0.0  ;;  %1671 = vmatpush1.bf16.msra.mxu0 %v1670_v1  ;;  %v100_v56 = vld [vmem:[%s3086_s0 + $0x278] sm:$0xff]  ;;  %v575_v60 = vld [vmem:[%s3087_s1 + $0x148] sm:$0xff]  ;;  %v480_v1 = vsel %vm149_vm0, %v131_v27, 0.0 }
  0xec   :  { %v2540_v16 = vsel %vm763_vm3, %v1261_v61, %v2416_v49  ;;  %475 = vadd.xlane.f32.xlu0 %v474_v39  ;;  %v221_v6 = vpop.xlane.xlu1 %220  ;;  %v1672_v49 = vpack.c.bf16 %v565_v4, %v563_v3  ;;  %v793_v39 = vadd.s32 4294967232, %v2082_v15  ;;  %v577_v61 = vld [vmem:[%s3087_s1 + $0x158] sm:$0xff]  ;;  %v576_v4 = vld [vmem:[%s3087_s1 + $0x150] sm:$0xff] }
  0xed   :  { %v170_v7 = vpop.xlane.xlu0 %169  ;;  %v886_v13 = vrot.slane %v221_v6, %v2526_v55  ;;  %v1684_v3 = vpack.c.bf16 %v577_v61, %v575_v60  ;;  %v593_v60 = vld [vmem:[%s3087_s1 + $0x1d8] sm:$0xff] }
  0xee   :  { %v783_v14 = vrot.slane %v170_v7, %v2402_v53  ;;  %1673 = vmatprep.subr.bf16.mxu0 %v1672_v49  ;;  %v148_v49 = vld [vmem:[%s3086_s0 + $0x3f8] sm:$0xff] }
  0xef   :  { %v2566_v0 = vsel %vm791_vm7, %v886_v13, %v2442_v8  ;;  %292 = vadd.xlane.f32.xlu1 %v291_v57  ;;  %v384_v8 = vsel %vm149_vm0, %v99_v63, 0.0  ;;  %1675 = vmatpush1.bf16.msra.mxu0 %v1674_v22  ;;  %v2650_v57 = vsub.s32 %v793_v39, %v2086_v18  ;;  %v579_v13 = vld [vmem:[%s3087_s1 + $0x168] sm:$0xff]  ;;  %v531_v22 = vsel %vm149_vm0, %v148_v49, 0.0 }
  0xf0   :  { %v2570_v23 = vsel %vm784_vm6, %v783_v14, %v2446_v10  ;;  %196 = vadd.xlane.f32.xlu0 %v195_v9  ;;  %v317_v28 = vpop.xlane.xlu1 %316  ;;  %v566_v10 = vld [vmem:[%s3087_s1 + $0x100] sm:$0xff]  ;;  %1677 = vmatprep.subr.bf16.mxu0 %v1676_v31  ;;  %v132_v9 = vld [vmem:[%s3086_s0 + $0x378] sm:$0xff] }
  0xf1   :  { %v266_v29 = vpop.xlane.xlu0 %265  ;;  %v1044_v35 = vrot.slane %v317_v28, %v2526_v55  ;;  %v1678_v38 = vpack.c.bf16 %v568_v34, %v566_v10  ;;  %v581_v14 = vld [vmem:[%s3087_s1 + $0x178] sm:$0xff]  ;;  %v583_v10 = vld [vmem:[%s3087_s1 + $0x188] sm:$0xff] }
  0xf2   :  { %v960_v36 = vrot.slane %v266_v29, %v2402_v53  ;;  %v585_v34 = vld [vmem:[%s3087_s1 + $0x198] sm:$0xff] }
  0xf3   :  { %v2596_v20 = vsel %vm791_vm7, %v1044_v35, %v2472_v21  ;;  %436 = vadd.xlane.f32.xlu1 %v435_v30  ;;  %v477_v21 = vsel %vm149_vm0, %v130_v19, 0.0  ;;  %1679 = vmatpush1.bf16.msra.mxu0 %v1678_v38  ;;  %v1690_v30 = vpack.c.bf16 %v580_v25, %v578_v24  ;;  %v1692_v37 = vpack.c.bf16 %v585_v34, %v583_v10  ;;  %v1485_v34 = vld [vmem:[%s3089_s3 + $0x8] sm:$0xff] }
  0xf4   :  { %v2600_v42 = vsel %vm784_vm6, %v960_v36, %v2476_v32  ;;  %385 = vadd.xlane.f32.xlu0 %v384_v8  ;;  %v410_v45 = vpop.xlane.xlu1 %409  ;;  %v570_v32 = vld [vmem:[%s3087_s1 + $0x120] sm:$0xff]  ;;  %1681 = vmatprep.subr.bf16.mxu0 %v1680_v47 }
  0xf5   :  { %v359_v46 = vpop.xlane.xlu0 %358  ;;  %v1197_v51 = vrot.slane %v410_v45, %v2402_v53  ;;  %v1682_v58 = vpack.c.bf16 %v572_v50, %v570_v32  ;;  %v586_v50 = vld [vmem:[%s3087_s1 + $0x1a0] sm:$0xff] }
  0xf6   :  { %v1113_v54 = vrot.slane %v359_v46, %v2294_v52  ;;  %v587_v46 = vld [vmem:[%s3087_s1 + $0x1a8] sm:$0xff] }
  0xf7   :  { %v2627_v40 = vsel %vm784_vm6, %v1197_v51, %v2503_v33  ;;  %529 = vadd.xlane.f32.xlu1 %v528_v43  ;;  %v387_v33 = vsel %vm149_vm0, %v100_v56, 0.0  ;;  %1683 = vmatpush1.bf16.msra.mxu0 %v1682_v58  ;;  %v589_v43 = vld [vmem:[%s3087_s1 + $0x1b8] sm:$0xff]  ;;  %v591_v58 = vld [vmem:[%s3087_s1 + $0x1c8] sm:$0xff] }
  0xf8   :  { %v2631_v59 = vsel %vm777_vm5, %v1113_v54, %v2507_v48  ;;  %478 = vadd.xlane.f32.xlu0 %v477_v21  ;;  %v503_v62 = vpop.xlane.xlu1 %502  ;;  %v574_v48 = vld [vmem:[%s3087_s1 + $0x140] sm:$0xff]  ;;  %1685 = vmatprep.subr.bf16.mxu0 %v1684_v3  ;;  %v1696_v32 = vpack.c.bf16 %v589_v43, %v587_v46  ;;  %v800_v54 = vadd.s32 4294967224, %v2082_v15  ;;  %v807_v43 = vadd.s32 4294967216, %v2082_v15 }
  0xf9   :  { %v452_v26 = vpop.xlane.xlu0 %451  ;;  %v1350_v6 = vrot.slane %v503_v62, %v2294_v52  ;;  %v1686_v11 = vpack.c.bf16 %v576_v4, %v574_v48 }
  0xfa   :  { %v1266_v7 = vrot.slane %v452_v26, %v2233_v5  ;;  %v1700_v26 = vpack.c.bf16 %v593_v60, %v591_v58  ;;  %v2738_v3 = vsub.s32 %v800_v54, %v2086_v18  ;;  %v1506_v58 = vld [vmem:[%s3089_s3 + $0xb0] sm:$0xff] }
  0xfb   :  { %v2660_v12 = vsel %vm777_vm5, %v1350_v6, %v2536_v2  ;;  %481 = vadd.xlane.f32.xlu1 %v480_v1  ;;  %v483_v2 = vsel %vm149_vm0, %v132_v9, 0.0  ;;  %1687 = vmatpush1.bf16.msra.mxu0 %v1686_v11  ;;  %v590_v1 = vld [vmem:[%s3087_s1 + $0x1c0] sm:$0xff]  ;;  %v597_v9 = vld [vmem:[%s3087_s1 + $0x1f8] sm:$0xff]  ;;  %vm1402_vm0 = vcmask 1041409  }
  0xfc   :  { %v2664_v5 = vsel %vm770_vm4, %v1266_v7, %v2540_v16  ;;  %388 = vadd.xlane.f32.xlu0 %v387_v33  ;;  %v224_v17 = vpop.xlane.xlu1 %223  ;;  %v1688_v16 = vpack.c.bf16 %v581_v14, %v579_v13  ;;  %v595_v7 = vld [vmem:[%s3087_s1 + $0x1e8] sm:$0xff] }
  0xfd   :  { %v173_v63 = vpop.xlane.xlu0 %172  ;;  %v891_v28 = vrot.slane %v224_v17, %v2650_v57  ;;  %v1704_v11 = vpack.c.bf16 %v597_v9, %v595_v7  ;;  %v1508_v7 = vld [vmem:[%s3089_s3 + $0xc0] sm:$0xff] }
  0xfe   :  { %v790_v29 = vrot.slane %v173_v63, %v2526_v55  ;;  %1689 = vmatprep.subr.bf16.mxu0 %v1688_v16 }
  0xff   :  { %v892_v8 = vsel %vm798_vm8, %v891_v28, %v2566_v0  ;;  %484 = vadd.xlane.f32.xlu1 %v483_v2  ;;  %1691 = vmatpush1.bf16.msra.mxu0 %v1690_v30  ;;  %v582_v0 = vld [vmem:[%s3087_s1 + $0x180] sm:$0xff] }
 0x100   :  { %v792_v31 = vsel %vm791_vm7, %v790_v29, %v2570_v23  ;;  %532 = vadd.xlane.f32.xlu0 %v531_v22  ;;  %v320_v35 = vpop.xlane.xlu1 %319  ;;  %v584_v23 = vld [vmem:[%s3087_s1 + $0x190] sm:$0xff]  ;;  %1693 = vmatprep.subr.bf16.mxu0 %v1692_v37  ;;  %v1500_v28 = vld [vmem:[%s3089_s3 + $0x80] sm:$0xff]  ;;  %v1501_v29 = vld [vmem:[%s3089_s3 + $0x88] sm:$0xff] }
 0x101   :  { %v269_v36 = vpop.xlane.xlu0 %268  ;;  %v1049_v19 = vrot.slane %v320_v35, %v2650_v57  ;;  %v1694_v41 = vpack.c.bf16 %v584_v23, %v582_v0  ;;  %v1484_v30 = vld [vmem:[%s3089_s3] sm:$0xff]  ;;  %v1708_v10 = vpack.c.bf16 %v1501_v29, %v1500_v28  ;;  %v1502_v35 = vld [vmem:[%s3089_s3 + $0x90] sm:$0xff] }
 0x102   :  { %v965_v38 = vrot.slane %v269_v36, %v2526_v55  ;;  %v1503_v36 = vld [vmem:[%s3089_s3 + $0x98] sm:$0xff]  ;;  %v1710_v23 = vpack.c.bf16 %v1485_v34, %v1484_v30  ;;  %v1494_v30 = vld [vmem:[%s3089_s3 + $0x50] sm:$0xff] }
 0x103   :  { %v1050_v44 = vsel %vm798_vm8, %v1049_v19, %v2596_v20  ;;  %1695 = vmatpush1.bf16.msra.mxu0 %v1694_v41  ;;  %v588_v20 = vld [vmem:[%s3087_s1 + $0x1b0] sm:$0xff]  ;;  %v1712_v19 = vpack.c.bf16 %v1503_v36, %v1502_v35  ;;  %v1487_v41 = vld [vmem:[%s3089_s3 + $0x18] sm:$0xff]  ;;  %1709 = vmatprep.subr.bf16.mxu1 %v1708_v10  ;;  %v1512_v36 = vld [vmem:[%s3089_s3 + $0xe0] sm:$0xff] }
 0x104   :  { %v966_v45 = vsel %vm791_vm7, %v965_v38, %v2600_v42  ;;  %v413_v21 = vpop.xlane.xlu1 %412  ;;  %v1698_v27 = vpack.c.bf16 %v588_v20, %v586_v50  ;;  %1697 = vmatprep.subr.bf16.mxu0 %v1696_v32  ;;  %v1486_v38 = vld [vmem:[%s3089_s3 + $0x10] sm:$0xff]  ;;  %1711 = vmatpush3.bf16.msra.mxu1 %v1710_v23  ;;  %v1495_v10 = vld [vmem:[%s3089_s3 + $0x58] sm:$0xff] }
 0x105   :  { %v362_v47 = vpop.xlane.xlu0 %361  ;;  %v1202_v42 = vrot.slane %v413_v21, %v2526_v55  ;;  %v1505_v21 = vld [vmem:[%s3089_s3 + $0xa8] sm:$0xff]  ;;  %1713 = vmatprep.subr.bf16.mxu1 %v1712_v19  ;;  %v1730_v23 = vpack.c.bf16 %v1495_v10, %v1494_v30 }
 0x106   :  { %v1118_v51 = vrot.slane %v362_v47, %v2402_v53  ;;  %v1714_v47 = vpack.c.bf16 %v1487_v41, %v1486_v38 }
 0x107   :  { %v1203_v56 = vsel %vm791_vm7, %v1202_v42, %v2627_v40  ;;  %1699 = vmatpush1.bf16.msra.mxu0 %v1698_v27  ;;  %v592_v40 = vld [vmem:[%s3087_s1 + $0x1d0] sm:$0xff]  ;;  %v1488_v42 = vld [vmem:[%s3089_s3 + $0x20] sm:$0xff] }
 0x108   :  { %v1119_v39 = vsel %vm784_vm6, %v1118_v51, %v2631_v59  ;;  %v506_v61 = vpop.xlane.xlu1 %505  ;;  %v1702_v48 = vpack.c.bf16 %v592_v40, %v590_v1  ;;  %1701 = vmatprep.subr.bf16.mxu0 %v1700_v26  ;;  %v1489_v51 = vld [vmem:[%s3089_s3 + $0x28] sm:$0xff]  ;;  %1715 = vmatpush3.bf16.msra.mxu1 %v1714_v47 }
 0x109   :  { %v455_v62 = vpop.xlane.xlu0 %454  ;;  %v1355_v59 = vrot.slane %v506_v61, %v2402_v53  ;;  %v2818_v61 = vsub.s32 %v807_v43, %v2086_v18 }
 0x10a   :  { %v1271_v33 = vrot.slane %v455_v62, %v2294_v52  ;;  %v1718_v62 = vpack.c.bf16 %v1489_v51, %v1488_v42 }
 0x10b   :  { %v1356_v4 = vsel %vm784_vm6, %v1355_v59, %v2660_v12  ;;  %1703 = vmatpush1.bf16.msra.mxu0 %v1702_v48  ;;  %v594_v12 = vld [vmem:[%s3087_s1 + $0x1e0] sm:$0xff]  ;;  %v1490_v59 = vld [vmem:[%s3089_s3 + $0x30] sm:$0xff] }
 0x10c   :  { %v1272_v6 = vsel %vm777_vm5, %v1271_v33, %v2664_v5  ;;  %v227_v52 = vpop.xlane.xlu1 %226  ;;  %v596_v5 = vld [vmem:[%s3087_s1 + $0x1f0] sm:$0xff]  ;;  %1705 = vmatprep.subr.bf16.mxu0 %v1704_v11  ;;  %v1491_v33 = vld [vmem:[%s3089_s3 + $0x38] sm:$0xff] }
 0x10d   :  { %v176_v49 = vpop.xlane.xlu0 %175  ;;  %v896_v13 = vrot.slane %v227_v52, %v2738_v3  ;;  %v1706_v17 = vpack.c.bf16 %v596_v5, %v594_v12  ;;  %v1722_v52 = vpack.c.bf16 %v1491_v33, %v1490_v59  ;;  %v1492_v5 = vld [vmem:[%s3089_s3 + $0x40] sm:$0xff] }
 0x10e   :  { %v797_v14 = vrot.slane %v176_v49, %v2650_v57 }
 0x10f   :  { %v897_v63 = vsel %vm805_vm9, %v896_v13, %v892_v8  ;;  %1707 = vmatpush1.bf16.msra.mxu0 %v1706_v17  ;;  %v1493_v13 = vld [vmem:[%s3089_s3 + $0x48] sm:$0xff] }
 0x110   :  { %v799_v2 = vsel %vm798_vm8, %v797_v14, %v792_v31  ;;  %v323_v22 = vpop.xlane.xlu1 %322 }
 0x111   :  { %v272_v16 = vpop.xlane.xlu0 %271  ;;  %v1054_v24 = vrot.slane %v323_v22, %v2738_v3  ;;  %v1510_v22 = vld [vmem:[%s3089_s3 + $0xd0] sm:$0xff] }
 0x112   :  { %v970_v25 = vrot.slane %v272_v16, %v2650_v57 }
 0x113   :  { %v2772_v8 = vsel %vm805_vm9, %v1054_v24, %v1050_v44  ;;  %v1504_v44 = vld [vmem:[%s3089_s3 + $0xa0] sm:$0xff]  ;;  %v1726_v24 = vpack.c.bf16 %v1493_v13, %v1492_v5 }
 0x114   :  { %v2775_v31 = vsel %vm798_vm8, %v970_v25, %v966_v45  ;;  %v416_v37 = vpop.xlane.xlu1 %415  ;;  %v1716_v20 = vpack.c.bf16 %v1505_v21, %v1504_v44  ;;  %v1496_v44 = vld [vmem:[%s3089_s3 + $0x60] sm:$0xff] }
 0x115   :  { %v365_v0 = vpop.xlane.xlu0 %364  ;;  %v1207_v45 = vrot.slane %v416_v37, %v2650_v57 }
 0x116   :  { %v1123_v46 = vrot.slane %v365_v0, %v2526_v55  ;;  %1717 = vmatprep.subr.bf16.mxu1 %v1716_v20  ;;  %v814_v0 = vadd.s32 4294967208, %v2082_v15 }
 0x117   :  { %v1208_v32 = vsel %vm798_vm8, %v1207_v45, %v1203_v56  ;;  %v1507_v56 = vld [vmem:[%s3089_s3 + $0xb8] sm:$0xff]  ;;  %1719 = vmatpush3.bf16.msra.mxu1 %v1718_v62  ;;  %v1497_v45 = vld [vmem:[%s3089_s3 + $0x68] sm:$0xff] }
 0x118   :  { %v1124_v50 = vsel %vm791_vm7, %v1123_v46, %v1119_v39  ;;  %v509_v54 = vpop.xlane.xlu1 %508  ;;  %v1720_v40 = vpack.c.bf16 %v1507_v56, %v1506_v58 }
 0x119   :  { %v458_v27 = vpop.xlane.xlu0 %457  ;;  %v1360_v39 = vrot.slane %v509_v54, %v2526_v55 }
 0x11a   :  { %v1276_v60 = vrot.slane %v458_v27, %v2402_v53  ;;  %1721 = vmatprep.subr.bf16.mxu1 %v1720_v40 }
 0x11b   :  { %v1361_v26 = vsel %vm791_vm7, %v1360_v39, %v1356_v4  ;;  %v1509_v4 = vld [vmem:[%s3089_s3 + $0xc8] sm:$0xff]  ;;  %1723 = vmatpush3.bf16.msra.mxu1 %v1722_v52 }
 0x11c   :  { %v1277_v1 = vsel %vm784_vm6, %v1276_v60, %v1272_v6  ;;  %v230_v53 = vpop.xlane.xlu1 %229  ;;  %v1724_v12 = vpack.c.bf16 %v1509_v4, %v1508_v7  ;;  %v821_v7 = vadd.s32 4294967200, %v2082_v15 }
 0x11d   :  { %v179_v48 = vpop.xlane.xlu0 %178  ;;  %v901_v6 = vrot.slane %v230_v53, %v2818_v61 }
 0x11e   :  { %v804_v9 = vrot.slane %v179_v48, %v2738_v3  ;;  %1725 = vmatprep.subr.bf16.mxu1 %v1724_v12  ;;  %v2902_v12 = vsub.s32 %v821_v7, %v2086_v18 }
 0x11f   :  { %v902_v49 = vsel %vm812_vm10, %v901_v6, %v897_v63  ;;  %v1511_v63 = vld [vmem:[%s3089_s3 + $0xd8] sm:$0xff]  ;;  %1727 = vmatpush3.bf16.msra.mxu1 %v1726_v24 }
 0x120   :  { %v806_v11 = vsel %vm805_vm9, %v804_v9, %v799_v2  ;;  %v326_v14 = vpop.xlane.xlu1 %325  ;;  %v1728_v29 = vpack.c.bf16 %v1511_v63, %v1510_v22 }
 0x121   :  { %v275_v17 = vpop.xlane.xlu0 %274  ;;  %v1059_v2 = vrot.slane %v326_v14, %v2818_v61 }
 0x122   :  { %v975_v16 = vrot.slane %v275_v17, %v2738_v3  ;;  %1729 = vmatprep.subr.bf16.mxu1 %v1728_v29 }
 0x123   :  { %v1060_v25 = vsel %vm812_vm10, %v1059_v2, %v2772_v8  ;;  %v1513_v8 = vld [vmem:[%s3089_s3 + $0xe8] sm:$0xff]  ;;  %1731 = vmatpush3.bf16.msra.mxu1 %v1730_v23 }
 0x124   :  { %v976_v28 = vsel %vm805_vm9, %v975_v16, %v2775_v31  ;;  %v419_v34 = vpop.xlane.xlu1 %418  ;;  %v1732_v41 = vpack.c.bf16 %v1513_v8, %v1512_v36 }
 0x125   :  { %v368_v35 = vpop.xlane.xlu0 %367  ;;  %v1212_v31 = vrot.slane %v419_v34, %v2738_v3 }
 0x126   :  { %v1128_v37 = vrot.slane %v368_v35, %v2650_v57  ;;  %1733 = vmatprep.subr.bf16.mxu1 %v1732_v41 }
 0x127   :  { %v1213_v19 = vsel %vm805_vm9, %v1212_v31, %v1208_v32  ;;  %v2882_v32 = vsub.s32 %v814_v0, %v2086_v18 }
 0x128   :  { %v1129_v38 = vsel %vm798_vm8, %v1128_v37, %v1124_v50  ;;  %v512_v46 = vpop.xlane.xlu1 %511  ;;  %v1734_v50 = vpack.c.bf16 %v1497_v45, %v1496_v44 }
 0x129   :  { %v461_v43 = vpop.xlane.xlu0 %460  ;;  %v1365_v21 = vrot.slane %v512_v46, %v2650_v57 }
 0x12a   :  { %v1281_v47 = vrot.slane %v461_v43, %v2526_v55  ;;  %1735 = vmatpush3.bf16.msra.mxu1 %v1734_v50 }
 0x12b   :  { %v1366_v20 = vsel %vm798_vm8, %v1365_v21, %v1361_v26 }
 0x12c   :  { %v1282_v42 = vsel %vm791_vm7, %v1281_v47, %v1277_v1  ;;  %v233_v51 = vpop.xlane.xlu1 %232 }
 0x12d   :  { %v182_v54 = vpop.xlane.xlu0 %181  ;;  %v906_v27 = vrot.slane %v233_v51, %v2882_v32 }
 0x12e   :  { %v811_v58 = vrot.slane %v182_v54, %v2818_v61  ;;  %v828_v54 = vadd.s32 4294967192, %v2082_v15 }
 0x12f   :  { %v907_v55 = vsel %vm819_vm11, %v906_v27, %v902_v49  ;;  %v835_v27 = vadd.s32 4294967184, %v2082_v15 }
 0x130   :  { %v813_v56 = vsel %vm812_vm10, %v811_v58, %v806_v11  ;;  %v329_v39 = vpop.xlane.xlu1 %328  ;;  %v842_v58 = vadd.s32 4294967176, %v2082_v15 }
 0x131   :  { %v278_v60 = vpop.xlane.xlu0 %277  ;;  %v1064_v62 = vrot.slane %v329_v39, %v2882_v32  ;;  %v2952_v39 = vsub.s32 %v828_v54, %v2086_v18 }
 0x132   :  { %v980_v26 = vrot.slane %v278_v60, %v2818_v61  ;;  %v2955_v60 = vsub.s32 %v835_v27, %v2086_v18 }
 0x133   :  { %v1065_v1 = vsel %vm819_vm11, %v1064_v62, %v1060_v25  ;;  %v2958_v62 = vsub.s32 %v842_v58, %v2086_v18 }
 0x134   :  { %v981_v40 = vsel %vm812_vm10, %v980_v26, %v976_v28  ;;  %v422_v59 = vpop.xlane.xlu1 %421 }
 0x135   :  { %v371_v33 = vpop.xlane.xlu0 %370  ;;  %v1217_v53 = vrot.slane %v422_v59, %v2818_v61 }
 0x136   :  { %v1133_v48 = vrot.slane %v371_v33, %v2738_v3 }
 0x137   :  { %v1218_v4 = vsel %vm812_vm10, %v1217_v53, %v1213_v19 }
 0x138   :  { %v1134_v6 = vsel %vm805_vm9, %v1133_v48, %v1129_v38  ;;  %v515_v9 = vpop.xlane.xlu1 %514 }
 0x139   :  { %v464_v52 = vpop.xlane.xlu0 %463  ;;  %v1370_v49 = vrot.slane %v515_v9, %v2738_v3 }
 0x13a   :  { %v1286_v11 = vrot.slane %v464_v52, %v2650_v57 }
 0x13b   :  { %v2905_v5 = vsel %vm805_vm9, %v1370_v49, %v1366_v20 }
 0x13c   :  { %v2908_v13 = vsel %vm798_vm8, %v1286_v11, %v1282_v42  ;;  %v236_v14 = vpop.xlane.xlu1 %235 }
 0x13d   :  { %v185_v17 = vpop.xlane.xlu0 %184  ;;  %v911_v22 = vrot.slane %v236_v14, %v2902_v12 }
 0x13e   :  { %v818_v63 = vrot.slane %v185_v17, %v2882_v32 }
 0x13f   :  { %v912_v2 = vsel %vm826_vm12, %v911_v22, %v907_v55 }
 0x140   :  { %v2914_v57 = vsel %vm819_vm11, %v818_v63, %v813_v56  ;;  %v332_v16 = vpop.xlane.xlu1 %331 }
 0x141   :  { %v281_v24 = vpop.xlane.xlu0 %280  ;;  %v1069_v25 = vrot.slane %v332_v16, %v2902_v12 }
 0x142   :  { %v985_v28 = vrot.slane %v281_v24, %v2882_v32 }
 0x143   :  { %v1070_v29 = vsel %vm826_vm12, %v1069_v25, %v1065_v1 }
 0x144   :  { %v2920_v30 = vsel %vm819_vm11, %v985_v28, %v981_v40  ;;  %v425_v10 = vpop.xlane.xlu1 %424 }
 0x145   :  { %v374_v34 = vpop.xlane.xlu0 %373  ;;  %v1222_v35 = vrot.slane %v425_v10, %v2882_v32 }
 0x146   :  { %v1138_v36 = vrot.slane %v374_v34, %v2818_v61 }
 0x147   :  { %v2925_v8 = vsel %vm819_vm11, %v1222_v35, %v1218_v4 }
 0x148   :  { %v2928_v31 = vsel %vm812_vm10, %v1138_v36, %v1134_v6  ;;  %v2930_v37 = vpop.xlane.xlu1 %517 }
 0x149   :  { %v2932_v0 = vpop.xlane.xlu0 %466 }
 0x14c   :  { %v239_v23 = vpop.xlane.xlu1 %238 }
 0x14d   :  { %v188_v19 = vpop.xlane.xlu0 %187  ;;  %v916_v40 = vrot.slane %v239_v23, %v2952_v39 }
 0x14e   :  { %v825_v16 = vrot.slane %v188_v19, %v2902_v12 }
 0x14f   :  { %v917_v4 = vsel %vm833_vm13, %v916_v40, %v912_v2 }
 0x150   :  { %v335_v38 = vpop.xlane.xlu1 %334  ;;  %v827_v35 = vsel %vm826_vm12, %v825_v16, %v2914_v57 }
 0x151   :  { %v284_v41 = vpop.xlane.xlu0 %283  ;;  %v1074_v59 = vrot.slane %v335_v38, %v2952_v39 }
 0x152   :  { %v990_v2 = vrot.slane %v284_v41, %v2902_v12 }
 0x153   :  { %v1075_v6 = vsel %vm833_vm13, %v1074_v59, %v1070_v29 }
 0x154   :  { %v2934_v44 = vpop.xlane.xlu1 %427  ;;  %v991_v36 = vsel %vm826_vm12, %v990_v2, %v2920_v30 }
 0x155   :  { %v2936_v45 = vpop.xlane.xlu0 %376  ;;  %v1227_v23 = vrot.slane %v2934_v44, %v2902_v12 }
 0x157   :  { %v1228_v58 = vsel %vm826_vm12, %v1227_v23, %v2925_v8  ;;  %v1291_v8 = vrot.slane %v2932_v0, %v2738_v3 }
 0x158   :  { %v2938_v46 = vpop.xlane.xlu1 %520 }
 0x159   :  { %v2940_v43 = vpop.xlane.xlu0 %469  ;;  %v1380_v0 = vrot.slane %v2938_v46, %v2882_v32 }
 0x15c   :  { %v242_v21 = vpop.xlane.xlu1 %241 }
 0x15d   :  { %v191_v47 = vpop.xlane.xlu0 %190  ;;  %v921_v15 = vrot.slane %v242_v21, %v2955_v60 }
 0x15e   :  { %v832_v24 = vrot.slane %v191_v47, %v2952_v39 }
 0x15f   :  { %v922_v52 = vsel %vm840_vm14, %v921_v15, %v917_v4 }
 0x160   :  { %v338_v50 = vpop.xlane.xlu1 %337  ;;  %v834_v19 = vsel %vm833_vm13, %v832_v24, %v827_v35 }
 0x161   :  { %v287_v20 = vpop.xlane.xlu0 %286  ;;  %v1079_v33 = vrot.slane %v338_v50, %v2955_v60 }
 0x162   :  { %v995_v29 = vrot.slane %v287_v20, %v2952_v39 }
 0x163   :  { %v1080_v49 = vsel %vm840_vm14, %v1079_v33, %v1075_v6  ;;  %v1375_v33 = vrot.slane %v2930_v37, %v2818_v61  ;;  %v1296_v37 = vrot.slane %v2940_v43, %v2818_v61 }
 0x164   :  { %v431_v42 = vpop.xlane.xlu1 %430  ;;  %v996_v21 = vsel %vm833_vm13, %v995_v29, %v991_v36 }
 0x165   :  { %v2942_v51 = vpop.xlane.xlu0 %379  ;;  %v1232_v47 = vrot.slane %v431_v42, %v2952_v39 }
 0x167   :  { %v1233_v40 = vsel %vm833_vm13, %v1232_v47, %v1228_v58  ;;  %v1514_v47 = vld [vmem:[%s3089_s3 + $0xf0] sm:$0xff] }
 0x168   :  { %v2947_v55 = vpop.xlane.xlu1 %523 }
 0x169   :  { %v2949_v56 = vpop.xlane.xlu0 %472  ;;  %v1385_v61 = vrot.slane %v2947_v55, %v2902_v12 }
 0x16c   :  { %v245_v26 = vpop.xlane.xlu1 %244 }
 0x16d   :  { %v194_v1 = vpop.xlane.xlu0 %193  ;;  %v926_v53 = vrot.slane %v245_v26, %v2958_v62 }
 0x16e   :  { %v839_v10 = vrot.slane %v194_v1, %v2955_v60 }
 0x16f   :  { %v927_v11 = vsel %vm847_vm15, %v926_v53, %v922_v52  ;;  %v1143_v53 = vrot.slane %v2936_v45, %v2882_v32  ;;  %v1376_v45 = vsel %vm812_vm10, %v1375_v33, %v2905_v5 }
 0x170   :  { %v341_v48 = vpop.xlane.xlu1 %340  ;;  %v841_v57 = vsel %vm840_vm14, %v839_v10, %v834_v19 }
 0x171   :  { %v290_v7 = vpop.xlane.xlu0 %289  ;;  %v1084_v9 = vrot.slane %v341_v48, %v2958_v62  ;;  %v1144_v3 = vsel %vm819_vm11, %v1143_v53, %v2928_v31  ;;  %v1608_v53 = vld [vmem:[%s3090_s4] ss:$0 sm:$0xff] }
 0x172   :  { %v1000_v34 = vrot.slane %v290_v7, %v2955_v60  ;;  %v1148_v7 = vrot.slane %v2942_v51, %v2902_v12  ;;  %v1301_v51 = vrot.slane %v2949_v56, %v2882_v32 }
 0x173   :  { %v1085_v14 = vsel %vm847_vm15, %v1084_v9, %v1080_v49 }
 0x174   :  { %v434_v17 = vpop.xlane.xlu1 %433  ;;  %v1408_v63 = vsel %vm1402_vm0, %v1085_v14, %v927_v11  ;;  %v1001_v54 = vsel %vm840_vm14, %v1000_v34, %v996_v21  ;;  %v1292_v11 = vsel %vm805_vm9, %v1291_v8, %v2908_v13  ;;  %v1149_v14 = vsel %vm826_vm12, %v1148_v7, %v1144_v3 }
 0x175   :  { %v383_v22 = vpop.xlane.xlu0 %382  ;;  %v1237_v30 = vrot.slane %v434_v17, %v2955_v60  ;;  %v1297_v13 = vsel %vm812_vm10, %v1296_v37, %v1292_v11 }
 0x176   :  { %v1153_v52 = vrot.slane %v383_v22, %v2952_v39  ;;  %v1302_v16 = vsel %vm819_vm11, %v1301_v51, %v1297_v13 }
 0x177   :  { %v1238_v15 = vsel %vm840_vm14, %v1237_v30, %v1233_v40  ;;  %v606_v30 = vsub.s32 1, %v2086_v18 }
 0x178   :  { %v2976_v25 = vpop.xlane.xlu1 %526  ;;  %v1154_v31 = vsel %vm833_vm13, %v1153_v52, %v1149_v14 }
 0x179   :  { %v476_v28 = vpop.xlane.xlu0 %475  ;;  %v1390_v46 = vrot.slane %v2976_v25, %v2952_v39 }
 0x17a   :  { %v1306_v43 = vrot.slane %v476_v28, %v2902_v12  ;;  %v1381_v12 = vsel %vm819_vm11, %v1380_v0, %v1376_v45 }
 0x17b   :  { %v1386_v24 = vsel %vm826_vm12, %v1385_v61, %v1381_v12 }
 0x17c   :  { %v293_v38 = vpop.xlane.xlu1 %292  ;;  %v1391_v10 = vsel %vm833_vm13, %v1390_v46, %v1386_v24 }
 0x17d   :  { %v197_v41 = vpop.xlane.xlu0 %196  ;;  %v1005_v50 = vrot.slane %v293_v38, %v2958_v62 }
 0x17e   :  { %v846_v20 = vrot.slane %v197_v41, %v2958_v62 }
 0x17f   :  { %v1006_v44 = vsel %vm847_vm15, %v1005_v50, %v1001_v54 }
 0x180   :  { %v848_v27 = vsel %vm847_vm15, %v846_v20, %v841_v57  ;;  %v437_v26 = vpop.xlane.xlu1 %436  ;;  %v1498_v20 = vld [vmem:[%s3089_s3 + $0x70] sm:$0xff]  ;;  %v1499_v57 = vld [vmem:[%s3089_s3 + $0x78] sm:$0xff] }
 0x181   :  { %v386_v1 = vpop.xlane.xlu0 %385  ;;  %v1403_v42 = vsel %vm1402_vm0, %v1006_v44, %v848_v27  ;;  %v1242_v59 = vrot.slane %v437_v26, %v2958_v62  ;;  %v1738_v54 = vpack.c.bf16 %v1499_v57, %v1498_v20  ;;  %v598_v44 = vld [vmem:[%s3088_s2] sm:$0x3]  ;;  %v602_v27 = vsub.s32 0, %v2086_v18  ;;  %s1741_s2 = scalar_lea.vmem %s1601_s13, 64 }
 0x182   :  { %v1158_v49 = vrot.slane %v386_v1, %v2955_v60  ;;  %v607_v58 = vrot.slane %v598_v44, %v606_v30  ;;  %p1742_p0 = scmp.ne.s32.totalorder %s1601_s13, %s1741_s2  ;;  %p1747_p2 = scmp.lt.s32.totalorder %s1741_s2, %s1741_s2 }
 0x183   :  { %v1243_v48 = vsel %vm847_vm15, %v1242_v59, %v1238_v15  ;;  %v603_v26 = vrot.slane %v598_v44, %v602_v27 }
 0x184   :  { %v530_v4 = vpop.xlane.xlu1 %529  ;;  %v1409_v9 = vsel %vm1404_vm1, %v1243_v48, %v1408_v63  ;;  %v1159_v56 = vsel %vm840_vm14, %v1158_v49, %v1154_v31  ;;  %p1748_p3 = por %p1747_p2, %p1746_p1 }
 0x185   :  { %v479_v6 = vpop.xlane.xlu0 %478  ;;  %v1395_v63 = vrot.slane %v530_v4, %v2955_v60 }
 0x186   :  { %v1311_v22 = vrot.slane %v479_v6, %v2952_v39  ;;  %v1307_v39 = vsel %vm826_vm12, %v1306_v43, %v1302_v16  ;;  %p1749_p4 = pnand %p1748_p3, %p1742_p0 }
 0x187   :  { %v1396_v23 = vsel %vm840_vm14, %v1395_v63, %v1391_v10 }
 0x188   :  { %v482_v5 = vpop.xlane.xlu1 %481  ;;  %v1312_v34 = vsel %vm833_vm13, %v1311_v22, %v1307_v39 }
 0x189   :  { %v389_v17 = vpop.xlane.xlu0 %388  ;;  %v1316_v55 = vrot.slane %v482_v5, %v2955_v60 }
 0x18a   :  { %v1163_v32 = vrot.slane %v389_v17, %v2958_v62 }
 0x18b   :  { %v1317_v36 = vsel %vm840_vm14, %v1316_v55, %v1312_v34 }
 0x18c   :  { %v1164_v2 = vsel %vm847_vm15, %v1163_v32, %v1159_v56  ;;  %v485_v25 = vpop.xlane.xlu1 %484 }
 0x18d   :  { %v533_v28 = vpop.xlane.xlu0 %532  ;;  %v1405_v29 = vsel %vm1404_vm1, %v1164_v2, %v1403_v42  ;;  %v1321_v60 = vrot.slane %v485_v25, %v2958_v62 }
 0x18e   :  { %v1400_v35 = vrot.slane %v533_v28, %v2958_v62  ;;  %v1515_v62 = vld [vmem:[%s3089_s3 + $0xf8] sm:$0xff] }
 0x18f   :  { %v1322_v38 = vsel %vm847_vm15, %v1321_v60, %v1317_v36  ;;  %v1736_v50 = vpack.c.bf16 %v1515_v62, %v1514_v47 }
 0x190   :  { %v1401_v19 = vsel %vm847_vm15, %v1400_v35, %v1396_v23  ;;  %v1407_v21 = vsel %vm1406_vm2, %v1322_v38, %v1405_v29 }
 0x191   :  { %v1410_v41 = vsel %vm1406_vm2, %v1401_v19, %v1409_v9  ;;  %1737 = vmatprep.subr.bf16.mxu1 %v1736_v50 }
 0x192   :  { %1477 = vmatprep.mubr.f32.mxu0 %v1410_v41  ;;  %1739 = vmatpush3.bf16.msra.mxu1 %v1738_v54 }
 0x193   :  { %1478 = vmatmul.mubr.f32.vlgmr.msra.gmra.mrb[0].mxu0 %v1407_v21 }
 0x266   :  { %v1479_v1 = vpop.f32.mrb[0].mxu0 }
 0x267   :  { %v1481_v42 = vpop.f32.mrb[1].mxu0  ;;  %v1480_v59 = vadd.f32 %v1479_v1, %v603_v26 }
 0x268   :  { %v1482_v40 = vadd.f32 %v1481_v42, %v607_v58 }
 0x26a   :  { %1587 = vmatprep.mubr.f32.mxu1 %v1482_v40 }
 0x26b   :  { %1588 = vmatmul.mubr.f32.vlgmr.msra.gmra.mrb[0].mxu1 %v1480_v59 }
 0x33e   :  { %v1641_v15 = vpop.f32.mrb[0].mxu1 }
 0x33f   :  { %v1642_v33 = vpop.f32.mrb[1].mxu1 }
 0x340   :  { %v1643_v48 = vadd.f32 %v1642_v33, %v1641_v15 }
 0x342   :  { %v1590_v8 = vadd.f32 %v1643_v48, %v1608_v53 }
 0x344   :  { %1593 = vst [vmem:[#allocation2] sm:$0xf] %v1590_v8 }
 0x345   :  { %1752 = shalt.err (!%p1749_p4)
}
 0x346   :  { %s1753_s0 = scalar_lea.hbm %s3091_s5, 64 }
 0x347   :  { %p1754_p5 = scmp.ne.s32.totalorder %s3091_s5, %s1753_s0  ;;  %p1757_p6 = scmp.lt.u32.totalorder %s1753_s0, %s3091_s5 }
 0x349   :  { %p1759_p7 = pnand %p1757_p6, %p1754_p5 }
 0x34b   :  { %1762 = shalt.err (!%p1759_p7)
}
 0x34c   :  { %1603 = dma.vmem_to_hbm [thread:$0]  %s1601_s13, 64, %s3091_s5, [#allocation3]  }
 0x34d   :  { %1763 = dma.done.wait [#allocation3], 64  }
 0x34e   :  { %1764 = vsyncadd [#allocation3], 4294967232 }
 0x34f   :  { %1607 = vsyncpa [#allocation3], 1 }

</bundles_post_ra>
